<compile_context>
chip_gen: v7x
topology: tpu7x:2x2x1
jax: 0.10.0
libtpu: 0.0.40
codegen_flags: <defaults>
</compile_context>

<pallas_src>
import functools

import jax
import jax.numpy as jnp
import numpy as np
from jax.experimental import pallas as pl
from jax.experimental.pallas import tpu as pltpu


def _cross_attn_kernel(
    q_in_ref,    # (block_q, d_model)   tgt + pos_dec   (compute dtype)
    k_in_ref,    # (Lk, dim_kv)         memory + pos_enc
    v_in_ref,    # (Lk, dim_kv)         memory
    tgt_ref,     # (block_q, d_model)   residual input (original dtype)
    wq_ref,      # (d_model, d_model)   pre-transposed, softmax scale folded in (compute dtype)
    bq_ref,      # (1, d_model)  f32    scale folded in
    wk_ref,      # (dim_kv, d_model)    pre-transposed (compute dtype)
    bk_ref,      # (1, d_model)  f32
    wv_ref,      # (dim_kv, d_model)    pre-transposed (compute dtype)
    bv_ref,      # (1, d_model)  f32
    wo_ref,      # (d_model, d_model)   pre-transposed (compute dtype)
    bo_ref,      # (1, d_model)  f32
    gamma_ref,   # (1, d_model)  f32
    beta_ref,    # (1, d_model)  f32
    out_ref,     # (block_q, d_model)
    *,
    nhead,
    head_dim,
    eps,
):
  cdt = wq_ref.dtype                      # MXU compute dtype (chosen in the wrapper)
  x_q = q_in_ref[...]                     # (bq, d_model)
  x_k = k_in_ref[...]                     # (Lk, dim_kv)
  x_v = v_in_ref[...]                     # (Lk, dim_kv)

  # Fused all-head projections (full-width MXU matmuls), f32 accumulation.
  q = jnp.dot(x_q, wq_ref[...], preferred_element_type=jnp.float32) + bq_ref[...]
  k = jnp.dot(x_k, wk_ref[...], preferred_element_type=jnp.float32) + bk_ref[...]
  v = jnp.dot(x_v, wv_ref[...], preferred_element_type=jnp.float32) + bv_ref[...]

  bq_rows, d_model = q.shape
  lk = k.shape[0]

  # Explicit one-shot head relayout: (seq, H*hd) -> (H, seq, hd), batch dim leading.
  qh = jnp.transpose(q.astype(cdt).reshape(bq_rows, nhead, head_dim), (1, 0, 2))
  kh = jnp.transpose(k.astype(cdt).reshape(lk, nhead, head_dim), (1, 0, 2))
  vh = jnp.transpose(v.astype(cdt).reshape(lk, nhead, head_dim), (1, 0, 2))

  # H-batched q @ k^T (1/sqrt(head_dim) scale already folded into wq/bq).
  s = jnp.einsum("hqd,hkd->hqk", qh, kh,
                 preferred_element_type=jnp.float32)          # (H, bq, Lk) f32
  s = s - jnp.max(s, axis=-1, keepdims=True)
  p = jnp.exp(s)                                              # un-normalized probs
  l = jnp.sum(p, axis=-1, keepdims=True)                      # (H, bq, 1)  f32

  # Deferred normalization: PV with un-normalized p, scale the small output instead.
  # TODO(synk): attention-weight dropout omitted (module runs in eval mode here).
  o = jnp.einsum("hqk,hkd->hqd", p.astype(cdt), vh,
                 preferred_element_type=jnp.float32)          # (H, bq, hd) f32
  o = o * pl.reciprocal(l, approx=False)
  o = jnp.transpose(o, (1, 0, 2)).reshape(bq_rows, d_model).astype(cdt)

  # Output projection (single full-width matmul).
  attn = jnp.dot(o, wo_ref[...], preferred_element_type=jnp.float32) + bo_ref[...]

  # Residual + LayerNorm (outer dropout is identity in eval); f32 math.
  x = tgt_ref[...].astype(jnp.float32) + attn
  mean = jnp.mean(x, axis=-1, keepdims=True)
  var = jnp.mean((x - mean) ** 2, axis=-1, keepdims=True)
  y = (x - mean) * jax.lax.rsqrt(var + eps) * gamma_ref[...] + beta_ref[...]
  out_ref[...] = y.astype(out_ref.dtype)


def _vmem_limit_bytes():
  """~75% of physical per-TC VMEM (≈48 MiB on v7x, ≈96 MiB on v5e/v6e)."""
  try:
    cap = pltpu.get_tpu_info().vmem_capacity_bytes
  except Exception:
    cap = 64 * 1024 * 1024      # conservative fallback (safe on every generation)
  return int(cap * 3 // 4)


def _round_up(x, m):
  return ((x + m - 1) // m) * m


def _choose_block_q(Lq, Lk, N, nhead, sublane, vmem_limit):
  # Live f32 score intermediate ≈ 2 * nhead * block_q * Lk * 4 bytes (s then p);
  # keep it within ~1/3 of scoped VMEM, leaving room for K/V (double-buffered),
  # the q/tgt/out tiles and the (single-buffered) weights.
  budget = max(vmem_limit // 3, 2 * 1024 * 1024)
  per_row = 2 * nhead * max(Lk, 1) * 4
  cap = max(budget // per_row, sublane)
  block_q = min(Lq, 256, cap)
  # v7x megacore: ensure the fully-parallel grid has >= 2 points even when N == 1.
  if N == 1 and block_q >= Lq and Lq >= 2 * sublane:
    block_q = _round_up(pl.cdiv(Lq, 2), sublane)
  if block_q >= Lq:
    return Lq
  return max(sublane, (block_q // sublane) * sublane)


def cross_attention_pallas(tgt, memory, params, *, nhead,
                           pos_enc=None, pos_dec=None, eps=1e-5,
                           block_q=None, compute_dtype=None):
  """tgt: (Lq, N, d_model), memory: (Lk, N, dim_kv) — PyTorch seq-first layout."""
  Lq, N, d_model = tgt.shape
  Lk, _, dim_kv = memory.shape
  head_dim = d_model // nhead

  cdt = jnp.dtype(compute_dtype) if compute_dtype is not None else jnp.dtype(tgt.dtype)

  q_in = tgt if pos_dec is None else tgt + pos_dec
  k_in = memory if pos_enc is None else memory + pos_enc
  v_in = memory

  # Batch-major for the kernel; cast to the compute dtype here so an (optional) down-cast
  # fuses with the pos-embed add / transpose and halves activation DMA bytes.
  q_in_b = jnp.transpose(q_in, (1, 0, 2)).astype(cdt)   # (N, Lq, d_model)
  k_in_b = jnp.transpose(k_in, (1, 0, 2)).astype(cdt)   # (N, Lk, dim_kv)
  v_in_b = jnp.transpose(v_in, (1, 0, 2)).astype(cdt)   # (N, Lk, dim_kv)
  tgt_b = jnp.transpose(tgt, (1, 0, 2))                 # (N, Lq, d_model) residual

  # One-time weight prep: transpose so the kernel does x @ W, fold the 1/sqrt(head_dim)
  # softmax scale into the query projection, cast weights to the MXU compute dtype.
  scale = 1.0 / float(np.sqrt(head_dim))
  f32 = jnp.float32
  wq_t = (params["wq"].astype(f32) * scale).T.astype(cdt)   # (d_model, d_model)
  bq_s = (params["bq"].astype(f32) * scale).reshape(1, d_model)
  wk_t = params["wk"].T.astype(cdt)                         # (dim_kv, d_model)
  bk = params["bk"].astype(f32).reshape(1, d_model)
  wv_t = params["wv"].T.astype(cdt)                         # (dim_kv, d_model)
  bv = params["bv"].astype(f32).reshape(1, d_model)
  wo_t = params["wo"].T.astype(cdt)                         # (d_model, d_model)
  bo = params["bo"].astype(f32).reshape(1, d_model)
  gamma = params["gamma"].astype(f32).reshape(1, d_model)
  beta = params["beta"].astype(f32).reshape(1, d_model)

  vmem_limit = _vmem_limit_bytes()
  sublane = max(8, 32 // jnp.dtype(cdt).itemsize)   # 8 for f32, 16 for bf16
  if block_q is None:
    block_q = _choose_block_q(Lq, Lk, N, nhead, sublane, vmem_limit)
  elif block_q < Lq:
    block_q = max(sublane, (min(block_q, Lq) // sublane) * sublane)
  else:
    block_q = Lq
  n_q = pl.cdiv(Lq, block_q)
  # TODO(synk): for very long Lk switch to an online-softmax (flash) loop over Lk tiles with
  # double-buffered K/V DMA; here K/V are resident whole per batch element.
  # TODO(synk): for tiny d_model/dim_kv (< 128, e.g. the test shapes) the last dim is
  # lane-sparse; production use expects tile-sized d_model / Lk extents.

  kernel = functools.partial(_cross_attn_kernel, nhead=nhead,
                             head_dim=head_dim, eps=eps)

  q_map = lambda b, qi: (b, qi, 0)
  kv_map = lambda b, qi: (b, 0, 0)
  w_map = lambda b, qi: (0, 0)

  def w_spec(shape):
    # Constant-index operands: single buffer (no dead double-buffer in VMEM).
    return pl.BlockSpec(shape, w_map, pipeline_mode=pl.Buffered(1))

  out_b = pl.pallas_call(
      kernel,
      out_shape=jax.ShapeDtypeStruct((N, Lq, d_model), tgt.dtype),
      grid_spec=pltpu.PrefetchScalarGridSpec(
          num_scalar_prefetch=0,
          grid=(N, n_q),
          in_specs=[
              pl.BlockSpec((pl.Squeezed(), block_q, d_model), q_map),   # q_in
              pl.BlockSpec((pl.Squeezed(), Lk, dim_kv), kv_map),        # k_in
              pl.BlockSpec((pl.Squeezed(), Lk, dim_kv), kv_map),        # v_in
              pl.BlockSpec((pl.Squeezed(), block_q, d_model), q_map),   # tgt residual
              w_spec((d_model, d_model)),    # wq (T, scaled, compute dtype)
              w_spec((1, d_model)),          # bq (scaled, f32)
              w_spec((dim_kv, d_model)),     # wk
              w_spec((1, d_model)),          # bk
              w_spec((dim_kv, d_model)),     # wv
              w_spec((1, d_model)),          # bv
              w_spec((d_model, d_model)),    # wo
              w_spec((1, d_model)),          # bo
              w_spec((1, d_model)),          # gamma
              w_spec((1, d_model)),          # beta
          ],
          out_specs=pl.BlockSpec((pl.Squeezed(), block_q, d_model), q_map),
      ),
      compiler_params=pltpu.CompilerParams(
          dimension_semantics=("parallel", "parallel"),
          vmem_limit_bytes=vmem_limit),
  )(q_in_b, k_in_b, v_in_b, tgt_b,
    wq_t, bq_s, wk_t, bk, wv_t, bv, wo_t, bo, gamma, beta)

  return jnp.transpose(out_b, (1, 0, 2))  # back to (Lq, N, d_model)


def cross_attention_reference(tgt, memory, params, *, nhead,
                              pos_enc=None, pos_dec=None, eps=1e-5):
  """Plain-JAX reference mirroring torch.nn.MultiheadAttention + LayerNorm (eval)."""
  Lq, N, E = tgt.shape
  Lk = memory.shape[0]
  hd = E // nhead
  q = tgt if pos_dec is None else tgt + pos_dec
  k = memory if pos_enc is None else memory + pos_enc
  v = memory
  qp = jnp.einsum("lne,de->lnd", q, params["wq"]) + params["bq"]
  kp = jnp.einsum("lnf,df->lnd", k, params["wk"]) + params["bk"]
  vp = jnp.einsum("lnf,df->lnd", v, params["wv"]) + params["bv"]
  qh = qp.reshape(Lq, N, nhead, hd).transpose(1, 2, 0, 3)
  kh = kp.reshape(Lk, N, nhead, hd).transpose(1, 2, 0, 3)
  vh = vp.reshape(Lk, N, nhead, hd).transpose(1, 2, 0, 3)
  s = jnp.einsum("nhqd,nhkd->nhqk", qh, kh) / jnp.sqrt(hd).astype(jnp.float32)
  p = jax.nn.softmax(s, axis=-1)
  o = jnp.einsum("nhqk,nhkd->nhqd", p, vh)
  o = o.transpose(2, 0, 1, 3).reshape(Lq, N, E)
  attn = jnp.einsum("lne,fe->lnf", o, params["wo"]) + params["bo"]
  x = tgt + attn
  mean = x.mean(-1, keepdims=True)
  var = ((x - mean) ** 2).mean(-1, keepdims=True)
  return (x - mean) / jnp.sqrt(var + eps) * params["gamma"] + params["beta"]


def make_params(key, d_model, dim_kv):
  ks = jax.random.split(key, 8)
  scale = 0.1
  return {
      "wq": scale * jax.random.normal(ks[0], (d_model, d_model), jnp.float32),
      "wk": scale * jax.random.normal(ks[1], (d_model, dim_kv), jnp.float32),
      "wv": scale * jax.random.normal(ks[2], (d_model, dim_kv), jnp.float32),
      "bq": scale * jax.random.normal(ks[3], (d_model,), jnp.float32),
      "bk": scale * jax.random.normal(ks[4], (d_model,), jnp.float32),
      "bv": scale * jax.random.normal(ks[5], (d_model,), jnp.float32),
      "wo": scale * jax.random.normal(ks[6], (d_model, d_model), jnp.float32),
      "bo": scale * jax.random.normal(ks[7], (d_model,), jnp.float32),
      "gamma": jnp.ones((d_model,), jnp.float32),
      "beta": jnp.zeros((d_model,), jnp.float32),
  }


if __name__ == "__main__":
  d_model, nhead, dim_kv = 32, 4, 16
  Lq, Lk, N = 8, 16, 2

  key = jax.random.PRNGKey(0)
  k_tgt, k_mem, k_pe, k_pd, k_par = jax.random.split(key, 5)
  tgt = jax.random.normal(k_tgt, (Lq, N, d_model), jnp.float32)
  memory = jax.random.normal(k_mem, (Lk, N, dim_kv), jnp.float32)
  pos_enc = jax.random.normal(k_pe, (Lk, N, dim_kv), jnp.float32)
  pos_dec = jax.random.normal(k_pd, (Lq, N, d_model), jnp.float32)
  params = make_params(k_par, d_model, dim_kv)

  ref = cross_attention_reference(tgt, memory, params, nhead=nhead,
                                  pos_enc=pos_enc, pos_dec=pos_dec)

  # f32 path: must match the reference tightly.
  out = cross_attention_pallas(tgt, memory, params, nhead=nhead,
                               pos_enc=pos_enc, pos_dec=pos_dec)
  out = jax.block_until_ready(out)
  np.testing.assert_allclose(np.asarray(out), np.asarray(ref),
                             rtol=1e-4, atol=1e-4)

  # bf16-MXU path (compute_dtype knob): validate it runs and stays close (loose tol).
  out_bf16 = cross_attention_pallas(tgt, memory, params, nhead=nhead,
                                    pos_enc=pos_enc, pos_dec=pos_dec,
                                    compute_dtype=jnp.bfloat16)
  out_bf16 = jax.block_until_ready(out_bf16)
  np.testing.assert_allclose(np.asarray(out_bf16), np.asarray(ref),
                             rtol=1e-1, atol=1e-1)

  print("KERNEL_OK")
</pallas_src>

<mosaic_0001>
module attributes {stable_mosaic.version = 11 : i64} {
  func.func @_cross_attn_kernel(%arg0: i32, %arg1: i32, %arg2: memref<1x8x32xf32, #tpu.memory_space<vmem>>, %arg3: memref<1x16x16xf32, #tpu.memory_space<vmem>>, %arg4: memref<1x16x16xf32, #tpu.memory_space<vmem>>, %arg5: memref<1x8x32xf32, #tpu.memory_space<vmem>>, %arg6: memref<32x32xf32, #tpu.memory_space<vmem>>, %arg7: memref<1x32xf32, #tpu.memory_space<vmem>>, %arg8: memref<16x32xf32, #tpu.memory_space<vmem>>, %arg9: memref<1x32xf32, #tpu.memory_space<vmem>>, %arg10: memref<16x32xf32, #tpu.memory_space<vmem>>, %arg11: memref<1x32xf32, #tpu.memory_space<vmem>>, %arg12: memref<32x32xf32, #tpu.memory_space<vmem>>, %arg13: memref<1x32xf32, #tpu.memory_space<vmem>>, %arg14: memref<1x32xf32, #tpu.memory_space<vmem>>, %arg15: memref<1x32xf32, #tpu.memory_space<vmem>>, %arg16: memref<1x8x32xf32, #tpu.memory_space<vmem>>) attributes {dimension_semantics = [#tpu.dimension_semantics<parallel>, #tpu.dimension_semantics<parallel>], iteration_bounds = array<i64: 2, 1>, scalar_prefetch = 0 : i64, scratch_operands = 0 : i64, tpu.core_type = #tpu.core_type<tc>, window_params = [{transform_indices = @transform_0, window_bounds = array<i64: 1, 8, 32>}, {transform_indices = @transform_1, window_bounds = array<i64: 1, 16, 16>}, {transform_indices = @transform_2, window_bounds = array<i64: 1, 16, 16>}, {transform_indices = @transform_3, window_bounds = array<i64: 1, 8, 32>}, {pipeline_mode = #tpu.pipeline_mode<synchronous>, transform_indices = @transform_4, window_bounds = array<i64: 32, 32>}, {pipeline_mode = #tpu.pipeline_mode<synchronous>, transform_indices = @transform_5, window_bounds = array<i64: 1, 32>}, {pipeline_mode = #tpu.pipeline_mode<synchronous>, transform_indices = @transform_6, window_bounds = array<i64: 16, 32>}, {pipeline_mode = #tpu.pipeline_mode<synchronous>, transform_indices = @transform_7, window_bounds = array<i64: 1, 32>}, {pipeline_mode = #tpu.pipeline_mode<synchronous>, transform_indices = @transform_8, window_bounds = array<i64: 16, 32>}, {pipeline_mode = #tpu.pipeline_mode<synchronous>, transform_indices = @transform_9, window_bounds = array<i64: 1, 32>}, {pipeline_mode = #tpu.pipeline_mode<synchronous>, transform_indices = @transform_10, window_bounds = array<i64: 32, 32>}, {pipeline_mode = #tpu.pipeline_mode<synchronous>, transform_indices = @transform_11, window_bounds = array<i64: 1, 32>}, {pipeline_mode = #tpu.pipeline_mode<synchronous>, transform_indices = @transform_12, window_bounds = array<i64: 1, 32>}, {pipeline_mode = #tpu.pipeline_mode<synchronous>, transform_indices = @transform_13, window_bounds = array<i64: 1, 32>}, {transform_indices = @transform_14, window_bounds = array<i64: 1, 8, 32>}]} {
    %c0 = arith.constant 0 : index
    %c0_0 = arith.constant 0 : index
    %c0_1 = arith.constant 0 : index
    %0 = vector.load %arg2[%c0, %c0_0, %c0_1] : memref<1x8x32xf32, #tpu.memory_space<vmem>>, vector<1x8x32xf32>
    %1 = vector.shape_cast %0 : vector<1x8x32xf32> to vector<8x32xf32>
    %c0_2 = arith.constant 0 : index
    %c0_3 = arith.constant 0 : index
    %c0_4 = arith.constant 0 : index
    %2 = vector.load %arg3[%c0_2, %c0_3, %c0_4] : memref<1x16x16xf32, #tpu.memory_space<vmem>>, vector<1x16x16xf32>
    %3 = vector.shape_cast %2 : vector<1x16x16xf32> to vector<16x16xf32>
    %c0_5 = arith.constant 0 : index
    %c0_6 = arith.constant 0 : index
    %c0_7 = arith.constant 0 : index
    %4 = vector.load %arg4[%c0_5, %c0_6, %c0_7] : memref<1x16x16xf32, #tpu.memory_space<vmem>>, vector<1x16x16xf32>
    %5 = vector.shape_cast %4 : vector<1x16x16xf32> to vector<16x16xf32>
    %c0_8 = arith.constant 0 : index
    %c0_9 = arith.constant 0 : index
    %6 = vector.load %arg6[%c0_8, %c0_9] : memref<32x32xf32, #tpu.memory_space<vmem>>, vector<32x32xf32>
    %cst = arith.constant dense<0.000000e+00> : vector<8x32xf32>
    %7 = tpu.matmul %1, %6, %cst {dimension_numbers = #tpu.dot_dimension_numbers<[1], [0], [0], [1], [0, 0, 1, 1], [], []>} : vector<8x32xf32>, vector<32x32xf32>, vector<8x32xf32> -> vector<8x32xf32>
    %c0_10 = arith.constant 0 : index
    %c0_11 = arith.constant 0 : index
    %8 = vector.load %arg7[%c0_10, %c0_11] : memref<1x32xf32, #tpu.memory_space<vmem>>, vector<1x32xf32>
    %9 = vector.broadcast %8 : vector<1x32xf32> to vector<8x32xf32>
    %10 = arith.addf %7, %9 : vector<8x32xf32>
    %c0_12 = arith.constant 0 : index
    %c0_13 = arith.constant 0 : index
    %11 = vector.load %arg8[%c0_12, %c0_13] : memref<16x32xf32, #tpu.memory_space<vmem>>, vector<16x32xf32>
    %cst_14 = arith.constant dense<0.000000e+00> : vector<16x32xf32>
    %12 = tpu.matmul %3, %11, %cst_14 {dimension_numbers = #tpu.dot_dimension_numbers<[1], [0], [0], [1], [0, 0, 1, 1], [], []>} : vector<16x16xf32>, vector<16x32xf32>, vector<16x32xf32> -> vector<16x32xf32>
    %c0_15 = arith.constant 0 : index
    %c0_16 = arith.constant 0 : index
    %13 = vector.load %arg9[%c0_15, %c0_16] : memref<1x32xf32, #tpu.memory_space<vmem>>, vector<1x32xf32>
    %14 = vector.broadcast %13 : vector<1x32xf32> to vector<16x32xf32>
    %15 = arith.addf %12, %14 : vector<16x32xf32>
    %c0_17 = arith.constant 0 : index
    %c0_18 = arith.constant 0 : index
    %16 = vector.load %arg10[%c0_17, %c0_18] : memref<16x32xf32, #tpu.memory_space<vmem>>, vector<16x32xf32>
    %cst_19 = arith.constant dense<0.000000e+00> : vector<16x32xf32>
    %17 = tpu.matmul %5, %16, %cst_19 {dimension_numbers = #tpu.dot_dimension_numbers<[1], [0], [0], [1], [0, 0, 1, 1], [], []>} : vector<16x16xf32>, vector<16x32xf32>, vector<16x32xf32> -> vector<16x32xf32>
    %c0_20 = arith.constant 0 : index
    %c0_21 = arith.constant 0 : index
    %18 = vector.load %arg11[%c0_20, %c0_21] : memref<1x32xf32, #tpu.memory_space<vmem>>, vector<1x32xf32>
    %19 = vector.broadcast %18 : vector<1x32xf32> to vector<16x32xf32>
    %20 = arith.addf %17, %19 : vector<16x32xf32>
    %21 = vector.shape_cast %10 : vector<8x32xf32> to vector<8x4x8xf32>
    %22 = tpu.transpose %21, [1, 0, 2] : vector<8x4x8xf32> -> vector<4x8x8xf32>
    %23 = vector.shape_cast %15 : vector<16x32xf32> to vector<16x4x8xf32>
    %24 = tpu.transpose %23, [1, 0, 2] : vector<16x4x8xf32> -> vector<4x16x8xf32>
    %25 = vector.shape_cast %20 : vector<16x32xf32> to vector<16x4x8xf32>
    %26 = tpu.transpose %25, [1, 0, 2] : vector<16x4x8xf32> -> vector<4x16x8xf32>
    "tpu.trace_start"() <{level = 10 : i32, message = "hqd,hkd->hqk"}> : () -> ()
    %cst_22 = arith.constant dense<0.000000e+00> : vector<4x8x16xf32>
    %27 = tpu.matmul %22, %24, %cst_22 {dimension_numbers = #tpu.dot_dimension_numbers<[2], [2], [1], [1], [0, 0, 0, 1, 1, 1], [0], [0]>} : vector<4x8x8xf32>, vector<4x16x8xf32>, vector<4x8x16xf32> -> vector<4x8x16xf32>
    "tpu.trace_stop"() : () -> ()
    %cst_23 = arith.constant dense<0xFF800000> : vector<4x8xf32>
    %28 = vector.multi_reduction <maximumf>, %27, %cst_23 [2] : vector<4x8x16xf32> to vector<4x8xf32>
    %29 = vector.shape_cast %28 : vector<4x8xf32> to vector<4x8x1xf32>
    %30 = vector.broadcast %29 : vector<4x8x1xf32> to vector<4x8x16xf32>
    %31 = arith.subf %27, %30 : vector<4x8x16xf32>
    %32 = math.exp %31 : vector<4x8x16xf32>
    %cst_24 = arith.constant dense<0.000000e+00> : vector<4x8xf32>
    %33 = vector.multi_reduction <add>, %32, %cst_24 [2] : vector<4x8x16xf32> to vector<4x8xf32>
    %34 = vector.shape_cast %33 : vector<4x8xf32> to vector<4x8x1xf32>
    "tpu.trace_start"() <{level = 10 : i32, message = "hqk,hkd->hqd"}> : () -> ()
    %cst_25 = arith.constant dense<0.000000e+00> : vector<4x8x8xf32>
    %35 = tpu.matmul %32, %26, %cst_25 {dimension_numbers = #tpu.dot_dimension_numbers<[2], [1], [1], [2], [0, 0, 0, 1, 1, 2], [0], [0]>} : vector<4x8x16xf32>, vector<4x16x8xf32>, vector<4x8x8xf32> -> vector<4x8x8xf32>
    "tpu.trace_stop"() : () -> ()
    %36 = tpu.reciprocal %34 : vector<4x8x1xf32> -> vector<4x8x1xf32>
    %37 = vector.broadcast %36 : vector<4x8x1xf32> to vector<4x8x8xf32>
    %38 = arith.mulf %35, %37 : vector<4x8x8xf32>
    %39 = tpu.transpose %38, [1, 0, 2] : vector<4x8x8xf32> -> vector<8x4x8xf32>
    %40 = vector.shape_cast %39 : vector<8x4x8xf32> to vector<8x32xf32>
    %c0_26 = arith.constant 0 : index
    %c0_27 = arith.constant 0 : index
    %41 = vector.load %arg12[%c0_26, %c0_27] : memref<32x32xf32, #tpu.memory_space<vmem>>, vector<32x32xf32>
    %cst_28 = arith.constant dense<0.000000e+00> : vector<8x32xf32>
    %42 = tpu.matmul %40, %41, %cst_28 {dimension_numbers = #tpu.dot_dimension_numbers<[1], [0], [0], [1], [0, 0, 1, 1], [], []>} : vector<8x32xf32>, vector<32x32xf32>, vector<8x32xf32> -> vector<8x32xf32>
    %c0_29 = arith.constant 0 : index
    %c0_30 = arith.constant 0 : index
    %43 = vector.load %arg13[%c0_29, %c0_30] : memref<1x32xf32, #tpu.memory_space<vmem>>, vector<1x32xf32>
    %44 = vector.broadcast %43 : vector<1x32xf32> to vector<8x32xf32>
    %45 = arith.addf %42, %44 : vector<8x32xf32>
    %c0_31 = arith.constant 0 : index
    %c0_32 = arith.constant 0 : index
    %c0_33 = arith.constant 0 : index
    %46 = vector.load %arg5[%c0_31, %c0_32, %c0_33] : memref<1x8x32xf32, #tpu.memory_space<vmem>>, vector<1x8x32xf32>
    %47 = vector.shape_cast %46 : vector<1x8x32xf32> to vector<8x32xf32>
    %48 = arith.addf %47, %45 : vector<8x32xf32>
    %cst_34 = arith.constant dense<0.000000e+00> : vector<8xf32>
    %49 = vector.multi_reduction <add>, %48, %cst_34 [1] : vector<8x32xf32> to vector<8xf32>
    %50 = vector.shape_cast %49 : vector<8xf32> to vector<8x1xf32>
    %cst_35 = arith.constant 3.200000e+01 : f32
    %51 = vector.broadcast %cst_35 : f32 to vector<8x1xf32>
    %52 = arith.divf %50, %51 : vector<8x1xf32>
    %53 = vector.broadcast %52 : vector<8x1xf32> to vector<8x32xf32>
    %54 = arith.subf %48, %53 : vector<8x32xf32>
    %55 = arith.mulf %54, %54 : vector<8x32xf32>
    %cst_36 = arith.constant dense<0.000000e+00> : vector<8xf32>
    %56 = vector.multi_reduction <add>, %55, %cst_36 [1] : vector<8x32xf32> to vector<8xf32>
    %57 = vector.shape_cast %56 : vector<8xf32> to vector<8x1xf32>
    %cst_37 = arith.constant 3.200000e+01 : f32
    %58 = vector.broadcast %cst_37 : f32 to vector<8x1xf32>
    %59 = arith.divf %57, %58 : vector<8x1xf32>
    %60 = vector.broadcast %52 : vector<8x1xf32> to vector<8x32xf32>
    %61 = arith.subf %48, %60 : vector<8x32xf32>
    %cst_38 = arith.constant 9.99999974E-6 : f32
    %62 = vector.broadcast %cst_38 : f32 to vector<8x1xf32>
    %63 = arith.addf %59, %62 : vector<8x1xf32>
    %64 = math.rsqrt %63 : vector<8x1xf32>
    %65 = vector.broadcast %64 : vector<8x1xf32> to vector<8x32xf32>
    %66 = arith.mulf %61, %65 : vector<8x32xf32>
    %c0_39 = arith.constant 0 : index
    %c0_40 = arith.constant 0 : index
    %67 = vector.load %arg14[%c0_39, %c0_40] : memref<1x32xf32, #tpu.memory_space<vmem>>, vector<1x32xf32>
    %68 = vector.broadcast %67 : vector<1x32xf32> to vector<8x32xf32>
    %69 = arith.mulf %66, %68 : vector<8x32xf32>
    %c0_41 = arith.constant 0 : index
    %c0_42 = arith.constant 0 : index
    %70 = vector.load %arg15[%c0_41, %c0_42] : memref<1x32xf32, #tpu.memory_space<vmem>>, vector<1x32xf32>
    %71 = vector.broadcast %70 : vector<1x32xf32> to vector<8x32xf32>
    %72 = arith.addf %69, %71 : vector<8x32xf32>
    %c0_43 = arith.constant 0 : index
    %c0_44 = arith.constant 0 : index
    %c0_45 = arith.constant 0 : index
    %73 = vector.load %arg16[%c0_43, %c0_44, %c0_45] : memref<1x8x32xf32, #tpu.memory_space<vmem>>, vector<1x8x32xf32>
    %74 = vector.shape_cast %73 : vector<1x8x32xf32> to vector<8x32xf32>
    %75 = vector.shape_cast %72 : vector<8x32xf32> to vector<1x8x32xf32>
    tpu.vector_store %arg16[%c0_43, %c0_44, %c0_45], %75 {strides = array<i32>} : memref<1x8x32xf32, #tpu.memory_space<vmem>>, vector<1x8x32xf32>,
    return
  }
  func.func @transform_0(%arg0: i32, %arg1: i32) -> (i32, i32, i32) {
    %c0_i32 = arith.constant 0 : i32
    %c0_i32_0 = arith.constant 0 : i32
    return %arg0, %arg1, %c0_i32 : i32, i32, i32
  }
  func.func @transform_1(%arg0: i32, %arg1: i32) -> (i32, i32, i32) {
    %c0_i32 = arith.constant 0 : i32
    %c0_i32_0 = arith.constant 0 : i32
    %c0_i32_1 = arith.constant 0 : i32
    return %arg0, %c0_i32, %c0_i32_0 : i32, i32, i32
  }
  func.func @transform_2(%arg0: i32, %arg1: i32) -> (i32, i32, i32) {
    %c0_i32 = arith.constant 0 : i32
    %c0_i32_0 = arith.constant 0 : i32
    %c0_i32_1 = arith.constant 0 : i32
    return %arg0, %c0_i32, %c0_i32_0 : i32, i32, i32
  }
  func.func @transform_3(%arg0: i32, %arg1: i32) -> (i32, i32, i32) {
    %c0_i32 = arith.constant 0 : i32
    %c0_i32_0 = arith.constant 0 : i32
    return %arg0, %arg1, %c0_i32 : i32, i32, i32
  }
  func.func @transform_4(%arg0: i32, %arg1: i32) -> (i32, i32) {
    %c0_i32 = arith.constant 0 : i32
    %c0_i32_0 = arith.constant 0 : i32
    %c0_i32_1 = arith.constant 0 : i32
    return %c0_i32, %c0_i32_0 : i32, i32
  }
  func.func @transform_5(%arg0: i32, %arg1: i32) -> (i32, i32) {
    %c0_i32 = arith.constant 0 : i32
    %c0_i32_0 = arith.constant 0 : i32
    %c0_i32_1 = arith.constant 0 : i32
    return %c0_i32, %c0_i32_0 : i32, i32
  }
  func.func @transform_6(%arg0: i32, %arg1: i32) -> (i32, i32) {
    %c0_i32 = arith.constant 0 : i32
    %c0_i32_0 = arith.constant 0 : i32
    %c0_i32_1 = arith.constant 0 : i32
    return %c0_i32, %c0_i32_0 : i32, i32
  }
  func.func @transform_7(%arg0: i32, %arg1: i32) -> (i32, i32) {
    %c0_i32 = arith.constant 0 : i32
    %c0_i32_0 = arith.constant 0 : i32
    %c0_i32_1 = arith.constant 0 : i32
    return %c0_i32, %c0_i32_0 : i32, i32
  }
  func.func @transform_8(%arg0: i32, %arg1: i32) -> (i32, i32) {
    %c0_i32 = arith.constant 0 : i32
    %c0_i32_0 = arith.constant 0 : i32
    %c0_i32_1 = arith.constant 0 : i32
    return %c0_i32, %c0_i32_0 : i32, i32
  }
  func.func @transform_9(%arg0: i32, %arg1: i32) -> (i32, i32) {
    %c0_i32 = arith.constant 0 : i32
    %c0_i32_0 = arith.constant 0 : i32
    %c0_i32_1 = arith.constant 0 : i32
    return %c0_i32, %c0_i32_0 : i32, i32
  }
  func.func @transform_10(%arg0: i32, %arg1: i32) -> (i32, i32) {
    %c0_i32 = arith.constant 0 : i32
    %c0_i32_0 = arith.constant 0 : i32
    %c0_i32_1 = arith.constant 0 : i32
    return %c0_i32, %c0_i32_0 : i32, i32
  }
  func.func @transform_11(%arg0: i32, %arg1: i32) -> (i32, i32) {
    %c0_i32 = arith.constant 0 : i32
    %c0_i32_0 = arith.constant 0 : i32
    %c0_i32_1 = arith.constant 0 : i32
    return %c0_i32, %c0_i32_0 : i32, i32
  }
  func.func @transform_12(%arg0: i32, %arg1: i32) -> (i32, i32) {
    %c0_i32 = arith.constant 0 : i32
    %c0_i32_0 = arith.constant 0 : i32
    %c0_i32_1 = arith.constant 0 : i32
    return %c0_i32, %c0_i32_0 : i32, i32
  }
  func.func @transform_13(%arg0: i32, %arg1: i32) -> (i32, i32) {
    %c0_i32 = arith.constant 0 : i32
    %c0_i32_0 = arith.constant 0 : i32
    %c0_i32_1 = arith.constant 0 : i32
    return %c0_i32, %c0_i32_0 : i32, i32
  }
  func.func @transform_14(%arg0: i32, %arg1: i32) -> (i32, i32, i32) {
    %c0_i32 = arith.constant 0 : i32
    %c0_i32_0 = arith.constant 0 : i32
    return %arg0, %arg1, %c0_i32 : i32, i32, i32
  }
}

</mosaic_0001>

<bundles_post_ra>
// kernel: tpu_custom_call.1
= control target key start
LH: loop header
LB: loop body
LE: loop exit
PB: predicated region body
PF: predicated region fallthrough
CT: control target
= control target key end

     0   :  { %s4226_s0 = inlined_call_operand.hbm [shape: f32[2,8,32], index: 0, kind: input, shape index: {}]   ;;  %s4227_s1 = inlined_call_operand.hbm [shape: f32[2,16,16], index: 1, kind: input, shape index: {}]   ;;  %s4228_s2 = inlined_call_operand.hbm [shape: f32[2,16,16], index: 2, kind: input, shape index: {}]   ;;  %s4229_s3 = inlined_call_operand.hbm [shape: f32[2,8,32], index: 3, kind: input, shape index: {}]   ;;  %s4230_s4 = inlined_call_operand.hbm [shape: f32[32,32], index: 4, kind: input, shape index: {}]   ;;  %s4231_s5 = inlined_call_operand.vmem [shape: f32[1,32], index: 5, kind: input, shape index: {}]   ;;  %s4232_s6 = inlined_call_operand.hbm [shape: f32[16,32], index: 6, kind: input, shape index: {}]   ;;  %s4233_s7 = inlined_call_operand.vmem [shape: f32[1,32], index: 7, kind: input, shape index: {}]   ;;  %s4234_s8 = inlined_call_operand.hbm [shape: f32[16,32], index: 8, kind: input, shape index: {}]   ;;  %s4235_s9 = inlined_call_operand.vmem [shape: f32[1,32], index: 9, kind: input, shape index: {}]   ;;  %s4236_s10 = inlined_call_operand.vmem [shape: f32[32,32], index: 10, kind: input, shape index: {}]   ;;  %s4237_s11 = inlined_call_operand.vmem [shape: f32[1,32], index: 11, kind: input, shape index: {}]   ;;  %s4238_s12 = inlined_call_operand.vmem [shape: f32[1,32], index: 12, kind: input, shape index: {}]   ;;  %s4239_s13 = inlined_call_operand.vmem [shape: f32[1,32], index: 13, kind: input, shape index: {}]   ;;  %s4240_s14 = inlined_call_operand.hbm [shape: f32[2,8,32], index: 14, kind: output, shape index: {}]  }
   0x1   :  { %4270 = sst [smem:[#allocation30_spill]] %s4227_s1 }
   0x2   :  { %4271 = sst [smem:[#allocation31_spill]] %s4230_s4 }
   0x3   :  { %4272 = sst [smem:[#allocation32_spill]] %s4231_s5 }
   0x4   :  { %4273 = sst [smem:[#allocation33_spill]] %s4232_s6 }
   0x5   :  { %4274 = sst [smem:[#allocation34_spill]] %s4233_s7 }
   0x6   :  { %4275 = sst [smem:[#allocation35_spill]] %s4235_s9 }
   0x7   :  { %4276 = sst [smem:[#allocation36_spill]] %s4236_s10 }
   0x8   :  { %4277 = sst [smem:[#allocation37_spill]] %s4237_s11 }
   0x9   :  { %4278 = sst [smem:[#allocation38_spill]] %s4238_s12 }
   0xa   :  { %4279 = sst [smem:[#allocation39_spill]] %s4239_s13 }
   0xb   :  { %4280 = sst [smem:[#allocation40_spill]] %s4240_s14 }
   0xc   :  { %19 = vsyncpa [#allocation3], 0 }
   0xd   :  { %21 = vsyncpa [#allocation3 + $0x1], 0 }
   0xe   :  { %22 = vsyncpa [#allocation6], 0 }
   0xf   :  { %24 = vsyncpa [#allocation6 + $0x1], 0 }
  0x10   :  { %25 = vsyncpa [#allocation9], 0 }
  0x11   :  { %27 = vsyncpa [#allocation9 + $0x1], 0 }
  0x12   :  { %28 = vsyncpa [#allocation12], 0 }
  0x13   :  { %29 = vsyncpa [#allocation4], 0 }
  0x14   :  { %31 = vsyncpa [#allocation4 + $0x1], 0  ;;  %s3566_s29 = smov 0   ;;  %s3568_s30 = smov 0  }
  0x15   :  { %s3570_s15 = smov 0   ;;  %s3572_s16 = smov 0  }
  0x16   :  { %s3574_s17 = smov 0   ;;  %s3576_s18 = smov 0  }
  0x17 LB: > { %4281 = sst [smem:[#allocation21_spill]] %s3448_s29  ;;  %s3597_s19 = sadd.s32 4294967295, %s3468_s18   ;;  %s3468_s18 = sphi %s3576_s18, %s37_s18   ;;  %s3464_s17 = sphi %s3574_s17, %s4345_s17   ;;  %s3460_s16 = sphi %s3572_s16, %s4344_s16   ;;  %s3456_s15 = sphi %s3570_s15, %s4340_s15   ;;  %s3452_s30 = sphi %s3568_s30, %s4343_s30   ;;  %s3448_s29 = sphi %s3566_s29, %s4342_s29  }
  0x18   : > { %4282 = sst [smem:[#allocation22_spill]] %s3456_s15  ;;  %s2774_s20 = sadd.s32 4294967294, %s3468_s18  }
  0x19   : > { %4283 = sst [smem:[#allocation23_spill]] %s3460_s16  ;;  %p65_p0 = scmp.ne.s32.totalorder %s3456_s15, %s3452_s30 }
  0x1a   : > { %4284 = sst [smem:[#allocation24_spill]] %s3597_s19  ;;  %p66_p1 = scmp.eq.s32.totalorder %s3468_s18, 0 }
  0x1b   : > { %p71_p2 = scmp.ne.s32.totalorder %s3452_s30, %s3448_s29  ;;  %p4246_p3 = scmp.eq.s32.totalorder %s3597_s19, 0 }
  0x1c   : > { %p387_p4 = scmp.eq.s32.totalorder %s3597_s19, 1  ;;  %p3608_p5 = por %p66_p1, %p65_p0 }
  0x1d   : > { %p393_p6 = scmp.eq.s32.totalorder %s2774_s20, 1  ;;  %p3614_p7 = por %p4246_p3, %p71_p2 }
  0x1e   : > { %p3618_p8 = por %p387_p4, %p65_p0  ;;  %p2775_p10 = scmp.ge.s32.totalorder %s3468_s18, 1 }
  0x1f   : > { %s4286_s23 = scalar_select %p3614_p7, 1, 0 }
  0x20   : > { %s4288_s24 = scalar_select %p3618_p8, 1, 0 }
  0x21   : > { %4287 = sst [smem:[#allocation25_spill]] %s4286_s23  ;;  %p3622_p9 = por %p393_p6, %p71_p2 }
  0x22   : > { %4289 = sst [smem:[#allocation26_spill]] %s4288_s24  ;;  %p400_p11 = scmp.lt.s32.totalorder %s3468_s18, 3 }
  0x23   : > { %s4290_s25 = scalar_select %p3622_p9, 1, 0 }
  0x24   : > { %p3628_p12 = pnand %p2775_p10, %p400_p11  ;;  %s3470_s27 = smov [#allocation10]  }
  0x25   : > { %4291 = sst [smem:[#allocation27_spill]] %s4290_s25  ;;  %s412_s28 = sshll.u32 %s3470_s27, 4  ;;  %s3632_s28 = int_to_ptr.vmem [resolvable:$true] %s412_s28 }
  0x26   : > { %s4292_s26 = scalar_select %p3628_p12, 1, 0 }
  0x27   : > { %p3049_p13 = pneg %p3628_p12  ;;  %s3471_s21 = smov [#allocation11]  }
  0x28   : > { %s428_s25 = sshll.u32 %s3471_s21, 4  ;;  %s4294_s4 = sld [smem:[#allocation31_spill]]  ;;  %s3643_s25 = int_to_ptr.vmem [resolvable:$true] %s428_s25 }
  0x29   : > { %p3639_p1 = pnand %p3049_p13, %p4246_p3 }
  0x2b   : > { %s4293_s20 = scalar_select %p3639_p1, 1, 0 }
  0x2c   : > { %p3654_p4 = pneg %p3639_p1 }
  0x2e   : > { %s3166_s27 = scalar_lea.hbm %s4294_s4, 512 }
  0x2f   : > { %p3167_p2 = scmp.ne.s32.totalorder %s4294_s4, %s3166_s27  ;;  %p3173_p11 = scmp.lt.u32.totalorder %s3166_s27, %s4294_s4 }
  0x30   : > { %s4295_s16 = scalar_select %p3654_p4, 1, 0 }
  0x31   : > { %p3169_p6 = pnand %p3654_p4, %p3167_p2 }
  0x33   : > { %p3170_p10 = pneg %p3169_p6 }
  0x35   : > { %p3175_p13 = pnand %p3173_p11, %p3170_p10 }
  0x37   : > { %3178 = shalt.err (!%p3175_p13)
}
  0x38   : > { %s3179_s12 = scalar_lea.vmem %s3632_s28, 512  ;;  %p3187_p8 = scmp.lt.s32.totalorder %s3632_s28, %s3632_s28 }
  0x39   : > { %p3180_p0 = scmp.ne.s32.totalorder %s3632_s28, %s3179_s12  ;;  %p3188_p7 = scmp.lt.s32.totalorder %s3179_s12, %s3179_s12 }
  0x3b   : > { %p3182_p3 = pnand %p3180_p0, %p3654_p4  ;;  %p3189_p2 = por %p3188_p7, %p3187_p8 }
  0x3d   : > { %p3183_p9 = pneg %p3182_p3 }
  0x3f   : > { %p3190_p6 = pnand %p3189_p2, %p3183_p9 }
  0x41   : > { %3193 = shalt.err (!%p3190_p6)
}
  0x42   : > { %s4250_s13 = smov 128   ;;  %s4252_s11 = smov 8  }
  0x43   : > { %3052 = dma.hbm_to_vmem [thread:$0]  (!%p3639_p1), %s4294_s4, 512, %s3632_s28, [#allocation9], %s4250_s13, %s4250_s13, %s4252_s11  }
  0x44   : > { %s4296_s6 = sld [smem:[#allocation33_spill]] }
  0x4a   : > { %s3194_s12 = scalar_lea.hbm %s4296_s6, 256 }
  0x4b   : > { %p3195_p3 = scmp.ne.s32.totalorder %s4296_s6, %s3194_s12  ;;  %p3201_p9 = scmp.lt.u32.totalorder %s3194_s12, %s4296_s6 }
  0x4d   : > { %p3197_p7 = pnand %p3195_p3, %p3654_p4 }
  0x4f   : > { %p3198_p8 = pneg %p3197_p7 }
  0x51   : > { %p3203_p0 = pnand %p3201_p9, %p3198_p8 }
  0x53   : > { %3206 = shalt.err (!%p3203_p0)
}
  0x54   : > { %s3207_s28 = scalar_lea.vmem %s3643_s25, 256  ;;  %p3215_p2 = scmp.lt.s32.totalorder %s3643_s25, %s3643_s25 }
  0x55   : > { %p3208_p10 = scmp.ne.s32.totalorder %s3643_s25, %s3207_s28  ;;  %p3216_p6 = scmp.lt.s32.totalorder %s3207_s28, %s3207_s28 }
  0x57   : > { %p3210_p11 = pnand %p3208_p10, %p3654_p4  ;;  %p3217_p3 = por %p3216_p6, %p3215_p2 }
  0x59   : > { %p3211_p13 = pneg %p3210_p11 }
  0x5b   : > { %p3218_p7 = pnand %p3217_p3, %p3211_p13 }
  0x5d   : > { %3221 = shalt.err (!%p3218_p7)
}
  0x5e   : > { %3055 = dma.hbm_to_vmem [thread:$0]  (!%p3639_p1), %s4296_s6, 256, %s3643_s25, [#allocation12], %s4250_s13, %s4250_s13, %s4252_s11  }
  0x5f   : > { %s4297_s10 = sadd.s32 1, %s3464_s17  ;;  %p3079_p9 = scmp.lt.s32.totalorder %s3468_s18, 2 }
  0x60   : > { %p51_p8 = scmp.ge.s32.totalorder %s4297_s10, 2  ;;  %s3708_s29 = sand.u32 1, %s3456_s15  }
  0x61   : > { %s4256_s14 = sand.u32 1, %s3468_s18   ;;  %s4298_s24 = smov %s4297_s10 }
  0x62   : > { %s4347_s24 = smov (%p51_p8, %s4298_s24), 0  ;;  %p3717_p0 = pnand %p3079_p9, %p3608_p5 }
  0x63   : > { %4299 = sst [smem:[#allocation28_spill]] %s4347_s24  ;;  %s53_s25 = ssub.s32 %s3464_s17, %s4347_s24 }
  0x64   : > { %s4300_s27 = scalar_select %p3717_p0, 1, 0 }
  0x65   : > { %s4254_s21 = sshll.u32 %s3708_s29, 4  ;;  %p56_p10 = scmp.eq.s32.totalorder %s53_s25, 0 }
  0x66   : > { %s4255_s12 = sshll.u32 %s3464_s17, 8  ;;  %s4301_s28 = sadd.s32 1, %s3456_s15 }
  0x67   : > { %s3728_s5 = scalar_select %p56_p10, %s3456_s15, %s4301_s28  }
  0x68   : > { %s4303_s1 = sld [smem:[#allocation30_spill]]  ;;  %s496_s22 = scalar_lea.vmem [#allocation5], %s4254_s21 }
  0x69   : > { %4302 = sst [smem:[#allocation29_spill]] %s3728_s5  ;;  %s503_s11 = sshll.u32 %s496_s22, 4  ;;  %s3739_s11 = int_to_ptr.vmem [resolvable:$true] %s503_s11 }
  0x6a   : > { %s3743_s25 = scalar_lea.sflag [#allocation6], %s4256_s14  ;;  %p3749_p11 = pneg %p3717_p0 }
  0x6e   : > { %s3735_s13 = scalar_lea.hbm %s4303_s1, %s4255_s12  ;;  %s3227_s22 = scalar_lea.hbm %s4303_s1, 512 }
  0x6f   : > { %s3222_s28 = scalar_lea.hbm %s3735_s13, 256  ;;  %p3228_p6 = scmp.lt.u32.totalorder %s3735_s13, %s4303_s1 }
  0x70   : > { %p3223_p5 = scmp.ne.s32.totalorder %s3735_s13, %s3222_s28  ;;  %p3229_p3 = scmp.lt.u32.totalorder %s3227_s22, %s3222_s28 }
  0x71   : > { %p3231_p8 = scmp.lt.u32.totalorder %s3222_s28, %s3735_s13 }
  0x72   : > { %p3225_p13 = pnand %p3749_p11, %p3223_p5  ;;  %p3230_p7 = por %p3229_p3, %p3228_p6 }
  0x74   : > { %p3226_p2 = pneg %p3225_p13  ;;  %p3232_p9 = por %p3231_p8, %p3230_p7 }
  0x76   : > { %p3233_p10 = pnand %p3232_p9, %p3226_p2 }
  0x78   : > { %3236 = shalt.err (!%p3233_p10)
}
  0x79   : > { %s3237_s14 = scalar_lea.vmem %s3739_s11, 256  ;;  %s3474_s9 = smov [#allocation5]  }
  0x7a   : > { %p3238_p5 = scmp.ne.s32.totalorder %s3739_s11, %s3237_s14  ;;  %s3242_s10 = sshll.u32 %s3474_s9, 4  ;;  %s3243_s10 = int_to_ptr.vmem [resolvable:$false] %s3242_s10 }
  0x7b   : > { %s3244_s21 = scalar_lea.vmem %s3243_s10, 512  ;;  %p3245_p1 = scmp.lt.s32.totalorder %s3739_s11, %s3243_s10 }
  0x7c   : > { %p3240_p13 = pnand %p3238_p5, %p3749_p11  ;;  %p3246_p4 = scmp.lt.s32.totalorder %s3244_s21, %s3237_s14 }
  0x7e   : > { %p3241_p12 = pneg %p3240_p13  ;;  %p3247_p6 = por %p3246_p4, %p3245_p1 }
  0x80   : > { %p3248_p3 = pnand %p3247_p6, %p3241_p12 }
  0x82   : > { %3251 = shalt.err (!%p3248_p3)
}
  0x83   : > { %s4305_s12 = smov 8   ;;  %s4306_s28 = smov 128  }
  0x84   : > { %3065 = dma.hbm_to_vmem [thread:$0]  (!%p3717_p0), %s3735_s13, 256, %s3739_s11, %s3743_s25, %s4306_s28, %s4306_s28, %s4305_s12  }
  0x85   : > { %s4307_s22 = sshll.u32 %s3464_s17, 8  ;;  %s4308_s21 = sshll.u32 %s3708_s29, 4 }
  0x86   : > { %s3781_s14 = scalar_lea.hbm %s4228_s2, %s4307_s22  ;;  %s517_s1 = scalar_lea.vmem [#allocation7], %s4308_s21 }
  0x87   : > { %s524_s6 = sshll.u32 %s517_s1, 4  ;;  %s3475_s24 = smov [#allocation13]   ;;  %s3785_s6 = int_to_ptr.vmem [resolvable:$true] %s524_s6 }
  0x88   : > { %s444_s5 = sshll.u32 %s3475_s24, 4  ;;  %s2780_s15 = sshll.u32 %s3708_s29, 3  ;;  %s445_s5 = int_to_ptr.vmem [resolvable:$true] %s444_s5 }
  0x89   : > { %s3252_s23 = scalar_lea.hbm %s4234_s8, 256  ;;  %p4309_p1 = scmp.ne.s32.totalorder %s4295_s16, 0 }
  0x8a   : > { %p3253_p12 = scmp.ne.s32.totalorder %s4234_s8, %s3252_s23  ;;  %p3259_p7 = scmp.lt.u32.totalorder %s3252_s23, %s4234_s8 }
  0x8c   : > { %p3255_p4 = pnand %p3253_p12, %p4309_p1 }
  0x8e   : > { %p3256_p2 = pneg %p3255_p4 }
  0x90   : > { %p3261_p8 = pnand %p3259_p7, %p3256_p2 }
  0x92   : > { %3264 = shalt.err (!%p3261_p8)
}
  0x93   : > { %s3265_s1 = scalar_lea.vmem %s445_s5, 256  ;;  %p3273_p13 = scmp.lt.s32.totalorder %s445_s5, %s445_s5 }
  0x94   : > { %p3266_p9 = scmp.ne.s32.totalorder %s445_s5, %s3265_s1  ;;  %p3274_p6 = scmp.lt.s32.totalorder %s3265_s1, %s3265_s1 }
  0x96   : > { %p3268_p10 = pnand %p3266_p9, %p4309_p1  ;;  %p3275_p3 = por %p3274_p6, %p3273_p13 }
  0x98   : > { %p3269_p5 = pneg %p3268_p10 }
  0x9a   : > { %p3276_p0 = pnand %p3275_p3, %p3269_p5 }
  0x9c   : > { %3279 = shalt.err (!%p3276_p0)
}
  0x9d   : > { %p4310_p12 = scmp.ne.s32.totalorder %s4293_s20, 0  ;;  %s2781_s16 = sshll.u32 %s3464_s17, 7 }
  0x9e   : > { %s3815_s10 = scalar_lea.hbm %s4226_s0, %s2781_s16  ;;  %s477_s20 = scalar_lea.vmem [#allocation2], %s2780_s15 }
  0x9f   : > { %3058 = dma.hbm_to_vmem [thread:$0]  (!%p4310_p12), %s4234_s8, 256, %s445_s5, [#allocation12], %s4306_s28, %s4306_s28, %s4305_s12  }
  0xa0   : > { %s485_s21 = sshll.u32 %s477_s20, 4  ;;  %s474_s13 = scalar_lea.sflag [#allocation3], %s3708_s29  ;;  %s486_s21 = int_to_ptr.vmem [resolvable:$true] %s485_s21 }
  0xa1   : > { %s3280_s11 = scalar_lea.hbm %s3815_s10, 128  ;;  %s3285_s9 = scalar_lea.hbm %s4226_s0, 256 }
  0xa2   : > { %p3281_p0 = scmp.ne.s32.totalorder %s3815_s10, %s3280_s11  ;;  %p3286_p2 = scmp.lt.u32.totalorder %s3815_s10, %s4226_s0 }
  0xa3   : > { %p3287_p7 = scmp.lt.u32.totalorder %s3285_s9, %s3280_s11  ;;  %p3289_p9 = scmp.lt.u32.totalorder %s3280_s11, %s3815_s10 }
  0xa4   : > { %p3283_p1 = pnand %p3281_p0, %p3749_p11 }
  0xa5   : > { %p3288_p8 = por %p3287_p7, %p3286_p2 }
  0xa6   : > { %p3284_p4 = pneg %p3283_p1 }
  0xa7   : > { %p3290_p10 = por %p3289_p9, %p3288_p8 }
  0xa9   : > { %p3291_p5 = pnand %p3290_p10, %p3284_p4 }
  0xab   : > { %3294 = shalt.err (!%p3291_p5)
}
  0xac   : > { %s3295_s19 = scalar_lea.vmem %s486_s21, 128  ;;  %s3476_s23 = smov [#allocation2]  }
  0xad   : > { %p3296_p13 = scmp.ne.s32.totalorder %s486_s21, %s3295_s19  ;;  %s3300_s24 = sshll.u32 %s3476_s23, 4  ;;  %s3301_s24 = int_to_ptr.vmem [resolvable:$false] %s3300_s24 }
  0xae   : > { %s3302_s20 = scalar_lea.vmem %s3301_s24, 256  ;;  %p3303_p12 = scmp.lt.s32.totalorder %s486_s21, %s3301_s24 }
  0xaf   : > { %p3298_p6 = pnand %p3296_p13, %p3749_p11  ;;  %p3304_p0 = scmp.lt.s32.totalorder %s3302_s20, %s3295_s19 }
  0xb1   : > { %p3299_p3 = pneg %p3298_p6  ;;  %p3305_p1 = por %p3304_p0, %p3303_p12 }
  0xb3   : > { %p3306_p2 = pnand %p3305_p1, %p3299_p3 }
  0xb5   : > { %3309 = shalt.err (!%p3306_p2)
}
  0xb6   : > { %p4311_p7 = scmp.ne.s32.totalorder %s4300_s27, 0  ;;  %s3842_s22 = scalar_lea.hbm %s4229_s3, %s2781_s16 }
  0xb7   : > { %s3310_s9 = scalar_lea.hbm %s3781_s14, 256  ;;  %s3315_s19 = scalar_lea.hbm %s4228_s2, 512 }
  0xb8   : > { %3062 = dma.hbm_to_vmem [thread:$0]  (!%p4311_p7), %s3815_s10, 128, %s486_s21, %s474_s13  }
  0xb9   : > { %p3311_p4 = scmp.ne.s32.totalorder %s3781_s14, %s3310_s9  ;;  %p3316_p10 = scmp.lt.u32.totalorder %s3781_s14, %s4228_s2 }
  0xba   : > { %p3317_p5 = scmp.lt.u32.totalorder %s3315_s19, %s3310_s9  ;;  %p3319_p6 = scmp.lt.u32.totalorder %s3310_s9, %s3781_s14 }
  0xbb   : > { %p3313_p8 = pnand %p3311_p4, %p3749_p11 }
  0xbc   : > { %p3318_p13 = por %p3317_p5, %p3316_p10 }
  0xbd   : > { %p3314_p9 = pneg %p3313_p8 }
  0xbe   : > { %p3320_p3 = por %p3319_p6, %p3318_p13 }
  0xc0   : > { %p3321_p12 = pnand %p3320_p3, %p3314_p9 }
  0xc2   : > { %3324 = shalt.err (!%p3321_p12)
}
  0xc3   : > { %s3325_s16 = scalar_lea.vmem %s3785_s6, 256  ;;  %s3477_s10 = smov [#allocation7]  }
  0xc4   : > { %p3326_p0 = scmp.ne.s32.totalorder %s3785_s6, %s3325_s16  ;;  %s3330_s21 = sshll.u32 %s3477_s10, 4  ;;  %s3331_s21 = int_to_ptr.vmem [resolvable:$false] %s3330_s21 }
  0xc5   : > { %s3332_s13 = scalar_lea.vmem %s3331_s21, 512  ;;  %p3333_p4 = scmp.lt.s32.totalorder %s3785_s6, %s3331_s21 }
  0xc6   : > { %p3328_p1 = pnand %p3326_p0, %p3749_p11  ;;  %p3334_p8 = scmp.lt.s32.totalorder %s3332_s13, %s3325_s16 }
  0xc8   : > { %p3329_p2 = pneg %p3328_p1  ;;  %p3335_p10 = por %p3334_p8, %p3333_p4 }
  0xca   : > { %p3336_p5 = pnand %p3335_p10, %p3329_p2 }
  0xcc   : > { %3339 = shalt.err (!%p3336_p5)
}
  0xcd   : > { %3068 = dma.hbm_to_vmem [thread:$0]  (!%p4311_p7), %s3781_s14, 256, %s3785_s6, %s3743_s25, %s4306_s28, %s4306_s28, %s4305_s12  }
  0xce   : > { %s538_s20 = scalar_lea.vmem [#allocation8], %s2780_s15  ;;  %s4312_s5 = sand.u32 1, %s3468_s18  }
  0xcf   : > { %s546_s11 = sshll.u32 %s538_s20, 4  ;;  %s535_s9 = scalar_lea.sflag [#allocation9], %s4312_s5  ;;  %s547_s11 = int_to_ptr.vmem [resolvable:$true] %s546_s11 }
  0xd0   : > { %s3340_s1 = scalar_lea.hbm %s3842_s22, 128  ;;  %s3345_s23 = scalar_lea.hbm %s4229_s3, 256 }
  0xd1   : > { %p3341_p9 = scmp.ne.s32.totalorder %s3842_s22, %s3340_s1  ;;  %p3346_p3 = scmp.lt.u32.totalorder %s3842_s22, %s4229_s3 }
  0xd2   : > { %p3347_p12 = scmp.lt.u32.totalorder %s3345_s23, %s3340_s1  ;;  %p3349_p1 = scmp.lt.u32.totalorder %s3340_s1, %s3842_s22 }
  0xd3   : > { %p3343_p13 = pnand %p3341_p9, %p3749_p11 }
  0xd4   : > { %p3348_p0 = por %p3347_p12, %p3346_p3 }
  0xd5   : > { %p3344_p6 = pneg %p3343_p13 }
  0xd6   : > { %p3350_p2 = por %p3349_p1, %p3348_p0 }
  0xd8   : > { %p3351_p4 = pnand %p3350_p2, %p3344_p6 }
  0xda   : > { %3354 = shalt.err (!%p3351_p4)
}
  0xdb   : > { %s3355_s6 = scalar_lea.vmem %s547_s11, 128  ;;  %s3478_s15 = smov [#allocation8]  }
  0xdc   : > { %p3356_p8 = scmp.ne.s32.totalorder %s547_s11, %s3355_s6  ;;  %s3360_s29 = sshll.u32 %s3478_s15, 4  ;;  %s3361_s29 = int_to_ptr.vmem [resolvable:$false] %s3360_s29 }
  0xdd   : > { %s3362_s25 = scalar_lea.vmem %s3361_s29, 256  ;;  %p3363_p9 = scmp.lt.s32.totalorder %s547_s11, %s3361_s29 }
  0xde   : > { %p3358_p10 = pnand %p3356_p8, %p3749_p11  ;;  %p3364_p13 = scmp.lt.s32.totalorder %s3362_s25, %s3355_s6 }
  0xe0   : > { %p3359_p5 = pneg %p3358_p10  ;;  %p3365_p7 = por %p3364_p13, %p3363_p9 }
  0xe2   : > { %p3366_p3 = pnand %p3365_p7, %p3359_p5 }
  0xe4   : > { %3369 = shalt.err (!%p3366_p3)
}
  0xe5   : > { %p4313_p12 = scmp.ne.s32.totalorder %s4300_s27, 0  ;;  %p4314_p6 = scmp.ne.s32.totalorder %s4292_s26, 0 }
  0xe6   : > { %s4315_s4 = sld [smem:[#allocation25_spill]] (!%p4314_p6)  ;;  %s3893_s12 = sand.u32 (!%p4314_p6), 1, %s3452_s30  }
  0xe7   : > { %3071 = dma.hbm_to_vmem [thread:$0]  (!%p4313_p12), %s3842_s22, 128, %s547_s11, %s535_s9  }
  0xe8   : > { %555 = sbr.rel (%p4314_p6) target bundleno = 1954 (0x7a2), region = 76  ;;  %s3896_s28 = sshll.u32 (!%p4314_p6), %s3893_s12, 3 }
  0xe9   : > { %s558_s14 = scalar_lea.sflag (!%p4314_p6), [#allocation3], %s3893_s12  ;;  %s561_s10 = scalar_lea.vmem (!%p4314_p6), [#allocation2], %s3896_s28 }
  0xec   : > { %p4316_p11 = scmp.ne.s32.totalorder (!%p4314_p6), %s4315_s4, 0 }
  0xef   : > { %3423 = dma.done.wait (%p4316_p11), %s558_s14, 128  }
  0xf0   : > { %3425 = vsyncadd (%p4316_p11), %s558_s14, 4294967168  ;;  %s4317_s27 = sld [smem:[#allocation24_spill]]  ;;  %s2792_s22 = sshll.u32 %s3893_s12, 4 }
  0xf1   : > { %s3906_s13 = scalar_lea.vmem [#allocation5], %s2792_s22 }
  0xf6   : > { %s566_s26 = sand.u32 1, %s4317_s27  }
  0xf7   : > { %s567_s21 = scalar_lea.sflag [#allocation6], %s566_s26 }
  0xf8   : > { %3427 = dma.done.wait (%p4316_p11), %s567_s21, 512  }
  0xf9   : > { %3429 = vsyncadd (%p4316_p11), %s567_s21, 4294966784  ;;  %s3912_s20 = scalar_lea.vmem [#allocation7], %s2792_s22  ;;  %s585_s11 = scalar_lea.sflag [#allocation9], %s566_s26 }
  0xfa   : > { %s588_s5 = scalar_lea.vmem [#allocation8], %s3896_s28 }
  0xfb   : > { %3431 = dma.done.wait (%p4316_p11), %s585_s11, 128  }
  0xfc   : > { %3433 = vsyncadd (%p4316_p11), %s585_s11, 4294967168  ;;  %p4318_p7 = scmp.eq.s32.totalorder %s4317_s27, 0 }
  0xfe   : > { %3435 = dma.done.wait (%p4318_p7), [#allocation9], 512   ;;  %p4319_p0 = pmov %p4318_p7 }
 0x100   : > { %3437 = vsyncadd (%p4319_p0), [#allocation9], 4294966784  ;;  %p4320_p1 = pmov %p4319_p0 }
 0x101   : > { %p4321_p2 = pmov %p4319_p0 }
 0x102   : > { %3439 = dma.done.wait (%p4320_p1), [#allocation12], 512  }
 0x103   : > { %3441 = vsyncadd (%p4321_p2), [#allocation12], 4294966784  ;;  %v3479_v0 = vmov 0.0|0.0   ;;  %vm3480_vm0 = vmmov 0   ;;  %v3481_v1 = vmov 0.0   ;;  %vm759_vm1 = vcmask 130048  }
 0x104   : > { %2979 = vmatprep.subr.bf16.mxu0 %v3479_v0  ;;  %2895 = vmatprep.mubr.msk.f32.mxu0 %vm3480_vm0, %v3481_v1  ;;  %v750_v2 = vld [vmem:[#allocation11] sm:$0xff]  ;;  %v751_v3 = vld [vmem:[#allocation11 + $0x8] sm:$0xff]  ;;  %v667_v9 = vld [vmem:[#allocation10 + $0x10] sm:$0xff]  ;;  %vm676_vm2 = vcmask 261120   ;;  %s4322_s7 = sld [smem:[#allocation34_spill]]  ;;  %s3482_s19 = smov 112   ;;  %v946_v35 = vlaneseq }
 0x105   : > { %v661_v4 = vld [vmem:[%s3906_s13] sm:$0xff]  ;;  %v2985_v5 = vpack.c.bf16 %v751_v3, %v750_v2  ;;  %v666_v7 = vld [vmem:[#allocation10 + $0x8] sm:$0xff]  ;;  %v668_v10 = vld [vmem:[#allocation10 + $0x18] sm:$0xff]  ;;  %s3483_s23 = smov 120   ;;  %s4323_s6 = sld [smem:[#allocation32_spill]]  ;;  %vm1661_vm3 = vcmask 64512  }
 0x106   : > { %2902 = vmatprep.mubr.msk.f32.mxu1 %vm759_vm1, %v661_v4  ;;  %v665_v6 = vld [vmem:[#allocation10] sm:$0xff]  ;;  %v841_v11 = vld [vmem:[#allocation13] sm:$0xff]  ;;  %v842_v12 = vld [vmem:[#allocation13 + $0x8] sm:$0xff]  ;;  %v2983_v14 = vpack.c.bf16 %v668_v10, %v667_v9  ;;  %s3484_s15 = smov 104   ;;  %s4324_s4 = sld [smem:[#allocation35_spill]]  ;;  %v947_v39 = vshrl.u32 %v946_v35, 7 }
 0x107   : > { %v2980_v8 = vpack.c.bf16 %v666_v7, %v665_v6  ;;  %2986 = vmatprep.subr.bf16.mxu1 %v2985_v5  ;;  %v662_v13 = vld [vmem:[%s3906_s13 + $0x8] sm:$0xff]  ;;  %v2989_v15 = vpack.c.bf16 %v842_v12, %v841_v11  ;;  %v663_v16 = vld [vmem:[%s3912_s20] sm:$0xff]  ;;  %v3485_v33 = vmov 1983009808   ;;  %v3486_v40 = vmov 1934713408   ;;  %vm4015_vm4 = vmpackc.low %vm1661_vm3, %vm1661_vm3 }
 0x108   : > { %2988 = vmatpush3.bf16.msra.mxu1 %v2985_v5  ;;  %v660_v17 = vld [vmem:[%s561_s10] sm:$0xff]  ;;  %v944_v34 = vunpack.c.l.s4 %v3485_v33  ;;  %v976_v41 = vunpack.c.l.s4 %v3486_v40  ;;  %s4327_s27 = sld [smem:[#allocation36_spill]]  ;;  %s3487_s9 = smov 16   ;;  %vm2464_vm5 = vcmask 195584  }
 0x109   : > { %2981 = vmatpush3.bf16.msra.mxu0 %v2980_v8  ;;  %2990 = vmatprep.subr.bf16.mxu1 %v2989_v15  ;;  %v664_v18 = vld [vmem:[%s3912_s20 + $0x8] sm:$0xff]  ;;  %s3488_s1 = smov 8   ;;  %s4328_s24 = sld [smem:[#allocation37_spill]] }
 0x10a   : > { %2982 = vmatprep.subr.bf16.mxu0 %v3479_v0  ;;  %v2801_v19 = vld [vmem:[%s4322_s7] ss:$0 sm:$0xff]  ;;  %v945_v38 = vunpack.c.0.s8 %v944_v34  ;;  %v977_v47 = vunpack.c.0.s8 %v976_v41  ;;  %s3489_s7 = smov 24   ;;  %s4329_s16 = sld [smem:[#allocation23_spill]] }
 0x10b   : > { %2903 = vmatmul.mubr.msk.f32.vlgmr.msra.gmra.mrb[0].mxu1 %vm759_vm1, %v662_v13  ;;  %v2799_v26 = vld [vmem:[%s4323_s6] ss:$0 sm:$0xff]  ;;  %s4331_s29 = sld [smem:[#allocation38_spill]]  ;;  %s4332_s14 = sld [smem:[#allocation39_spill]] }
 0x10c   : > { %2992 = vmatpush3.bf16.msra.mxu1 %v2989_v15  ;;  %2909 = vmatprep.mubr.msk.f32.mxu1 %vm759_vm1, %v663_v16  ;;  %v2804_v29 = vld [vmem:[%s4324_s4] ss:$0 sm:$0xff]  ;;  %v3975_v44 = vsub.s32 %v945_v38, %v947_v39  ;;  %v3979_v58 = vsub.s32 %v977_v47, %v947_v39  ;;  %s659_s26 = scalar_lea.vmem [#allocation14], %s3896_s28  ;;  %s4333_s20 = sld [smem:[#allocation40_spill]] }
 0x10d   : > { %2984 = vmatpush3.bf16.msra.mxu0 %v2983_v14  ;;  %2997 = vmatprep.subr.bf16.mxu1 %v3479_v0  ;;  %s2598_s22 = sshll.u32 %s659_s26, 4  ;;  %s3490_s28 = smov [#allocation14]   ;;  %s4178_s22 = int_to_ptr.vmem [resolvable:$true] %s2598_s22 }
 0x10e   : > { %2993 = vmatprep.subr.bf16.mxu0 %v3479_v0 }
 0x10f   : > { %2910 = vmatmul.mubr.msk.f32.vlgmr.msra.gmra.mrb[2].mxu1 %vm759_vm1, %v664_v18 }
 0x110   : > { %2896 = vmatmul.mubr.msk.f32.vlgmr.msra.gmra.mrb[0].mxu0 %vm676_vm2, %v660_v17  ;;  %2923 = vmatprep.mubr.msk.f32.mxu1 %vm3480_vm0, %v3481_v1  ;;  %s2840_s10 = sshll.u32 %s4329_s16, 7 }
 0x111   : > { %2916 = vmatprep.mubr.msk.f32.mxu0 %vm3480_vm0, %v3481_v1 }
 0x112   : > { %s4176_s11 = scalar_lea.hbm %s4333_s20, %s2840_s10 }
 0x1de   : > { %v2904_v20 = vpop.f32.mrb[0].mxu1 }
 0x1df   : > { %v838_v21 = vadd.f32 %v2904_v20, %v2801_v19  ;;  %v832_v22 = vpop.f32.mrb[1].mxu1 }
 0x1e0   : > { %v833_v24 = vadd.f32 %v2801_v19, %v832_v22 }
 0x1e1   : > { %1087 = vrot.lane.b32.xlu1 %v838_v21, %s3482_s19  ;;  %1081 = vrot.lane.b32.xlu0 %v838_v21, %s3483_s23 }
 0x1e2   : > { %v2911_v28 = vpop.f32.mrb[2].mxu1 }
 0x1e3   : > { %v746_v23 = vpop.f32.mrb[0].mxu0  ;;  %v3965_v30 = vadd.f32 %v2911_v28, %v2804_v29  ;;  %v922_v31 = vpop.f32.mrb[3].mxu1 }
 0x1e4   : > { %v2897_v25 = vpop.f32.mrb[1].mxu0  ;;  %v3956_v27 = vadd.f32 %v2799_v26, %v746_v23  ;;  %v3968_v32 = vadd.f32 %v2804_v29, %v922_v31 }
 0x1e5   : > { %1085 = vrot.lane.b32.xlu1 %v833_v24, %s3482_s19  ;;  %1079 = vrot.lane.b32.xlu0 %v833_v24, %s3483_s23 }
 0x1e9   : > { %1093 = vrot.lane.b32.xlu1 %v838_v21, %s3484_s15  ;;  %1091 = vrot.lane.b32.xlu0 %v833_v24, %s3484_s15 }
 0x1ed   : > { %935 = vrot.lane.b32.xlu1 %v3956_v27, %s3482_s19  ;;  %932 = vrot.lane.b32.xlu0 %v3956_v27, %s3483_s23 }
 0x1f1   : > { %938 = vrot.lane.b32.xlu0 %v3956_v27, %s3484_s15  ;;  %1373 = vrot.lane.b32.xlu1 %v3965_v30, %s3483_s23 }
 0x1f5   : > { %1379 = vrot.lane.b32.xlu0 %v3965_v30, %s3482_s19  ;;  %1377 = vrot.lane.b32.xlu1 %v3968_v32, %s3482_s19 }
 0x1f9   : > { %1371 = vrot.lane.b32.xlu0 %v3968_v32, %s3483_s23 }
 0x1fd   : > { %1385 = vrot.lane.b32.xlu0 %v3965_v30, %s3484_s15 }
 0x253   : > { %v1088_v36 = vpop.permute.xlu1 %1087  ;;  %v1082_v37 = vpop.permute.xlu0 %1081 }
 0x254   : > { %v1165_v45 = vcombine.low %v838_v21, %v1088_v36  ;;  %v1166_v46 = vcombine.high %v838_v21, %v1088_v36 }
 0x256   : > { %v1173_v56 = vrot.slane %v1165_v45, %v3975_v44  ;;  %v1180_v57 = vrot.slane %v1166_v46, %v3975_v44 }
 0x257   : > { %v1086_v42 = vpop.permute.xlu1 %1085  ;;  %v1080_v43 = vpop.permute.xlu0 %1079 }
 0x258   : > { %v1097_v48 = vcombine.low %v833_v24, %v1086_v42  ;;  %v1098_v49 = vcombine.high %v833_v24, %v1086_v42 }
 0x25a   : > { %v1105_v63 = vrot.slane %v1097_v48, %v3975_v44  ;;  %v1112_v2 = vrot.slane %v1098_v49, %v3975_v44 }
 0x25b   : > { %v1094_v50 = vpop.permute.xlu1 %1093  ;;  %v1092_v51 = vpop.permute.xlu0 %1091 }
 0x25c   : > { %v1181_v52 = vcombine.low %v1082_v37, %v1094_v50  ;;  %v1182_v53 = vcombine.high %v1082_v37, %v1094_v50  ;;  %v1113_v54 = vcombine.low %v1080_v43, %v1092_v51  ;;  %v1114_v55 = vcombine.high %v1080_v43, %v1092_v51 }
 0x25e   : > { %v1189_v59 = vrot.slane %v1181_v52, %v3975_v44  ;;  %v1196_v60 = vrot.slane %v1182_v53, %v3975_v44  ;;  %v1121_v61 = vrot.slane %v1113_v54, %v3975_v44  ;;  %v1128_v62 = vrot.slane %v1114_v55, %v3975_v44 }
 0x25f   : > { %v933_v19 = vpop.permute.xlu0 %932  ;;  %v936_v43 = vpop.permute.xlu1 %935 }
 0x260   : > { %v1197_v3 = vcombine.low %v1173_v56, %v1189_v59  ;;  %v1198_v4 = vcombine.high %v1173_v56, %v1189_v59  ;;  %v1213_v5 = vcombine.low %v1180_v57, %v1196_v60  ;;  %v1214_v6 = vcombine.high %v1180_v57, %v1196_v60 }
 0x261   : > { %v1129_v7 = vcombine.low %v1105_v63, %v1121_v61  ;;  %v1130_v8 = vcombine.high %v1105_v63, %v1121_v61  ;;  %v1145_v9 = vcombine.low %v1112_v2, %v1128_v62  ;;  %v1146_v10 = vcombine.high %v1112_v2, %v1128_v62 }
 0x262   : > { %v1205_v11 = vrot.slane %v1197_v3, %v3979_v58  ;;  %v1212_v12 = vrot.slane %v1198_v4, %v3979_v58  ;;  %v1221_v13 = vrot.slane %v1213_v5, %v3979_v58  ;;  %v1228_v14 = vrot.slane %v1214_v6, %v3979_v58 }
 0x263   : > { %v1137_v15 = vrot.slane %v1129_v7, %v3979_v58  ;;  %v1144_v16 = vrot.slane %v1130_v8, %v3979_v58  ;;  %v1153_v17 = vrot.slane %v1145_v9, %v3979_v58  ;;  %v1160_v18 = vrot.slane %v1146_v10, %v3979_v58  ;;  %v939_v45 = vpop.permute.xlu0 %938 }
 0x264   : > { %v1301_v20 = vcombine.low %v1205_v11, %v1212_v12  ;;  %v2811_v21 = vcombine.high %v1205_v11, %v1212_v12  ;;  %v1317_v22 = vcombine.low %v1221_v13, %v1228_v14  ;;  %v2812_v23 = vcombine.high %v1221_v13, %v1228_v14 }
 0x265   : > { %v1233_v24 = vcombine.low %v1137_v15, %v1144_v16  ;;  %v2809_v25 = vcombine.high %v1137_v15, %v1144_v16  ;;  %v1249_v26 = vcombine.low %v1153_v17, %v1160_v18  ;;  %v2810_v28 = vcombine.high %v1153_v17, %v1160_v18 }
 0x266   : > { %v1308_v29 = vrot.slane %v1301_v20, %v3975_v44  ;;  %v1316_v31 = vrot.slane %v2811_v21, %v3975_v44  ;;  %v1324_v33 = vrot.slane %v1317_v22, %v3975_v44  ;;  %v1332_v34 = vrot.slane %v2812_v23, %v3975_v44 }
 0x267   : > { %v1240_v35 = vrot.slane %v1233_v24, %v3975_v44  ;;  %v1248_v36 = vrot.slane %v2809_v25, %v3975_v44  ;;  %v1256_v37 = vrot.slane %v1249_v26, %v3975_v44  ;;  %v1264_v38 = vrot.slane %v2810_v28, %v3975_v44 }
 0x268   : > { %v1333_v39 = vcombine.low %v1308_v29, %v1316_v31  ;;  %v1349_v40 = vcombine.low %v1324_v33, %v1332_v34  ;;  %v941_v50 = vcombine.low %v3956_v27, %v936_v43  ;;  %v942_v51 = vcombine.high %v3956_v27, %v936_v43 }
 0x269   : > { %v1265_v41 = vcombine.low %v1240_v35, %v1248_v36  ;;  %v1281_v42 = vcombine.low %v1256_v37, %v1264_v38  ;;  %v957_v52 = vcombine.low %v933_v19, %v939_v45  ;;  %v958_v53 = vcombine.high %v933_v19, %v939_v45 }
 0x26a   : > { %v1341_v46 = vrot.slane %v1333_v39, %v3979_v58  ;;  %v1357_v47 = vrot.slane %v1349_v40, %v3979_v58  ;;  %v949_v59 = vrot.slane %v941_v50, %v3975_v44  ;;  %v956_v60 = vrot.slane %v942_v51, %v3975_v44 }
 0x26b   : > { %v1273_v48 = vrot.slane %v1265_v41, %v3979_v58  ;;  %v1289_v49 = vrot.slane %v1281_v42, %v3979_v58  ;;  %v965_v61 = vrot.slane %v957_v52, %v3975_v44  ;;  %v972_v62 = vrot.slane %v958_v53, %v3975_v44 }
 0x26c   : > { %v1365_v55 = vcombine.low %v1341_v46, %v1357_v47  ;;  %v1366_v57 = vcombine.high %v1341_v46, %v1357_v47  ;;  %v1334_v27 = vcombine.high %v1308_v29, %v1316_v31  ;;  %v1350_v8 = vcombine.high %v1324_v33, %v1332_v34 }
 0x26d   : > { %v1297_v54 = vcombine.low %v1273_v48, %v1289_v49  ;;  %v1298_v56 = vcombine.high %v1273_v48, %v1289_v49  ;;  %v973_v4 = vcombine.low %v949_v59, %v965_v61  ;;  %v974_v5 = vcombine.high %v949_v59, %v965_v61 }
 0x26e   : > { %v989_v6 = vcombine.low %v956_v60, %v972_v62  ;;  %v990_v7 = vcombine.high %v956_v60, %v972_v62  ;;  %v1266_v9 = vcombine.high %v1240_v35, %v1248_v36  ;;  %v1282_v10 = vcombine.high %v1256_v37, %v1264_v38  ;;  %v1380_v62 = vpop.permute.xlu0 %1379 }
 0x26f   : > { %v2994_v2 = vpack.c.bf16 %v1365_v55, %v1297_v54  ;;  %v2998_v3 = vpack.c.bf16 %v1366_v57, %v1298_v56  ;;  %v981_v11 = vrot.slane %v973_v4, %v3979_v58  ;;  %v988_v12 = vrot.slane %v974_v5, %v3979_v58 }
 0x270   : > { %v997_v13 = vrot.slane %v989_v6, %v3979_v58  ;;  %v1004_v14 = vrot.slane %v990_v7, %v3979_v58  ;;  %v1348_v19 = vrot.slane %v1334_v27, %v3979_v58  ;;  %v1364_v20 = vrot.slane %v1350_v8, %v3979_v58 }
 0x271   : > { %2996 = vmatpush3.bf16.xpose.msk.msra.mxu0 %vm4015_vm4, %v2994_v2  ;;  %3000 = vmatpush3.bf16.xpose.msk.msra.mxu1 %vm4015_vm4, %v2998_v3  ;;  %v1009_v15 = vcombine.low %v981_v11, %v988_v12  ;;  %v2807_v16 = vcombine.high %v981_v11, %v988_v12  ;;  %v1280_v21 = vrot.slane %v1266_v9, %v3979_v58  ;;  %v1374_v2 = vpop.permute.xlu1 %1373 }
 0x272   : > { %3001 = vmatprep.subr.bf16.mxu0 %v3479_v0  ;;  %3005 = vmatprep.subr.bf16.mxu1 %v3479_v0  ;;  %v1025_v17 = vcombine.low %v997_v13, %v1004_v14  ;;  %v2808_v18 = vcombine.high %v997_v13, %v1004_v14  ;;  %v1296_v22 = vrot.slane %v1282_v10, %v3979_v58  ;;  %v1372_v63 = vpop.permute.xlu0 %1371 }
 0x273   : > { %v1016_v23 = vrot.slane %v1009_v15, %v3975_v44  ;;  %v1024_v24 = vrot.slane %v2807_v16, %v3975_v44  ;;  %v1367_v33 = vcombine.low %v1348_v19, %v1364_v20  ;;  %v1368_v35 = vcombine.high %v1348_v19, %v1364_v20 }
 0x274   : > { %v1032_v25 = vrot.slane %v1025_v17, %v3975_v44  ;;  %v1040_v26 = vrot.slane %v2808_v18, %v3975_v44  ;;  %v1299_v31 = vcombine.low %v1280_v21, %v1296_v22  ;;  %v1300_v34 = vcombine.high %v1280_v21, %v1296_v22 }
 0x275   : > { %v1041_v28 = vcombine.low %v1016_v23, %v1024_v24  ;;  %v1042_v38 = vcombine.high %v1016_v23, %v1024_v24  ;;  %v1457_v3 = vcombine.low %v3965_v30, %v1380_v62  ;;  %v1458_v4 = vcombine.high %v3965_v30, %v1380_v62  ;;  %v1378_v11 = vpop.permute.xlu1 %1377 }
 0x276   : > { %v1057_v29 = vcombine.low %v1032_v25, %v1040_v26  ;;  %v1058_v39 = vcombine.high %v1032_v25, %v1040_v26  ;;  %v3002_v42 = vpack.c.bf16 %v1367_v33, %v1299_v31  ;;  %v3006_v43 = vpack.c.bf16 %v1368_v35, %v1300_v34  ;;  %v1386_v27 = vpop.permute.xlu0 %1385 }
 0x277   : > { %v1049_v36 = vrot.slane %v1041_v28, %v3979_v58  ;;  %v1056_v45 = vrot.slane %v1042_v38, %v3979_v58  ;;  %v1473_v5 = vcombine.low %v1374_v2, %v1386_v27  ;;  %v1474_v6 = vcombine.high %v1374_v2, %v1386_v27 }
 0x278   : > { %v1065_v37 = vrot.slane %v1057_v29, %v3979_v58  ;;  %v1072_v46 = vrot.slane %v1058_v39, %v3979_v58  ;;  %v1465_v7 = vrot.slane %v1457_v3, %v3975_v44  ;;  %v1472_v8 = vrot.slane %v1458_v4, %v3975_v44 }
 0x279   : > { %v1481_v9 = vrot.slane %v1473_v5, %v3975_v44  ;;  %v1488_v10 = vrot.slane %v1474_v6, %v3975_v44  ;;  %v1389_v23 = vcombine.low %v3968_v32, %v1378_v11  ;;  %v1390_v24 = vcombine.high %v3968_v32, %v1378_v11 }
 0x27a   : > { %v1073_v40 = vcombine.low %v1049_v36, %v1065_v37  ;;  %v1074_v41 = vcombine.high %v1049_v36, %v1065_v37  ;;  %v1075_v47 = vcombine.low %v1056_v45, %v1072_v46  ;;  %v1076_v48 = vcombine.high %v1056_v45, %v1072_v46 }
 0x27b   : > { %v1489_v12 = vcombine.low %v1465_v7, %v1481_v9  ;;  %v1490_v13 = vcombine.high %v1465_v7, %v1481_v9  ;;  %v1505_v14 = vcombine.low %v1472_v8, %v1488_v10  ;;  %v1506_v15 = vcombine.high %v1472_v8, %v1488_v10 }
 0x27c   : > { %2917 = vmatmul.mubr.msk.f32.vlgmr.msra.gmra.mrb[2].mxu0 %vm1661_vm3, %v1073_v40  ;;  %2924 = vmatmul.mubr.msk.f32.vlgmr.msra.gmra.mrb[4].mxu1 %vm1661_vm3, %v1074_v41  ;;  %v1397_v37 = vrot.slane %v1389_v23, %v3975_v44  ;;  %v1404_v38 = vrot.slane %v1390_v24, %v3975_v44 }
 0x27d   : > { %3004 = vmatpush3.bf16.xpose.msk.msra.mxu0 %vm4015_vm4, %v3002_v42  ;;  %3008 = vmatpush3.bf16.xpose.msk.msra.mxu1 %vm4015_vm4, %v3006_v43  ;;  %v1497_v16 = vrot.slane %v1489_v12, %v3979_v58  ;;  %v1504_v17 = vrot.slane %v1490_v13, %v3979_v58  ;;  %v1513_v30 = vrot.slane %v1505_v14, %v3979_v58 }
 0x27e   : > { %2930 = vmatprep.mubr.msk.f32.mxu0 %vm3480_vm0, %v3481_v1  ;;  %2937 = vmatprep.mubr.msk.f32.mxu1 %vm3480_vm0, %v3481_v1  ;;  %v1520_v18 = vrot.slane %v1506_v15, %v3979_v58 }
 0x27f   : > { %3009 = vmatprep.subr.bf16.mxu1 %v3479_v0  ;;  %3015 = vmatprep.subr.bf16.mxu0 %v3479_v0  ;;  %v1593_v28 = vcombine.low %v1497_v16, %v1504_v17  ;;  %v2815_v29 = vcombine.high %v1497_v16, %v1504_v17 }
 0x280   : > { %v1609_v31 = vcombine.low %v1513_v30, %v1520_v18  ;;  %v2816_v33 = vcombine.high %v1513_v30, %v1520_v18 }
 0x281   : > { %v1608_v41 = vrot.slane %v2815_v29, %v3975_v44 }
 0x282   : > { %v1616_v42 = vrot.slane %v1609_v31, %v3975_v44  ;;  %v1624_v43 = vrot.slane %v2816_v33, %v3975_v44 }
 0x284   : > { %2931 = vmatmul.mubr.msk.f32.vlgmr.msra.gmra.mrb[4].mxu0 %vm1661_vm3, %v1075_v47  ;;  %2938 = vmatmul.mubr.msk.f32.vlgmr.msra.gmra.mrb[6].mxu1 %vm1661_vm3, %v1076_v48  ;;  %v1642_v3 = vcombine.high %v1616_v42, %v1624_v43 }
 0x285   : > { %2944 = vmatprep.mubr.msk.f32.mxu1 %vm3480_vm0, %v3481_v1  ;;  %2958 = vmatprep.mubr.msk.f32.mxu0 %vm3480_vm0, %v3481_v1 }
 0x286   : > { %v1656_v30 = vrot.slane %v1642_v3, %v3979_v58 }
 0x34f   : > { %v1737_v49 = vpop.f32.mrb[2].mxu0  ;;  %v1816_v50 = vpop.f32.mrb[4].mxu1 }
 0x350   : > { %v2918_v51 = vpop.f32.mrb[3].mxu0  ;;  %v2925_v52 = vpop.f32.mrb[5].mxu1  ;;  %v1981_v53 = vsel %vm759_vm1, %v1816_v50, -inf  ;;  %v1978_v54 = vsel %vm759_vm1, %v1737_v49, -inf }
 0x351   : > { %1982 = vmax.xlane.f32.xlu0 %v1981_v53  ;;  %1979 = vmax.xlane.f32.xlu1 %v1978_v54 }
 0x357   : > { %v4061_v55 = vpop.f32.mrb[4].mxu0  ;;  %v4063_v56 = vpop.f32.mrb[6].mxu1 }
 0x358   : > { %v2932_v57 = vpop.f32.mrb[5].mxu0  ;;  %v2939_v59 = vpop.f32.mrb[7].mxu1  ;;  %v1987_v60 = vsel %vm759_vm1, %v4063_v56, -inf  ;;  %v1984_v61 = vsel %vm759_vm1, %v4061_v55, -inf }
 0x359   : > { %1988 = vmax.xlane.f32.xlu0 %v1987_v60  ;;  %v1641_v60 = vcombine.low %v1616_v42, %v1624_v43  ;;  %v2466_v43 = vld [vmem:[%s4327_s27] sm:$0xff] }
 0x35b   : > { %v1649_v11 = vrot.slane %v1641_v60, %v3979_v58 }
 0x362   : > { %1383 = vrot.lane.b32.xlu1 %v3968_v32, %s3484_s15  ;;  %v1600_v32 = vrot.slane %v1593_v28, %v3975_v44 }
 0x364   : > { %v1625_v59 = vcombine.low %v1600_v32, %v1608_v41  ;;  %v1626_v2 = vcombine.high %v1600_v32, %v1608_v41 }
 0x366   : > { %v1633_v10 = vrot.slane %v1625_v59, %v3979_v58  ;;  %v1640_v17 = vrot.slane %v1626_v2, %v3979_v58 }
 0x368   : > { %v1657_v23 = vcombine.low %v1633_v10, %v1649_v11 }
 0x386   : > { %1985 = vmax.xlane.f32.xlu1 %v1984_v61 }
 0x3de   : > { %v1983_v19 = vpop.xlane.xlu0 %1982  ;;  %v1980_v20 = vpop.xlane.xlu1 %1979 }
 0x3df   : > { %v1991_v21 = vsub.f32 %v1816_v50, %v1983_v19  ;;  %v1990_v22 = vsub.f32 %v1737_v49, %v1980_v20 }
 0x3e1   : > { %v1996_v25 = vmul.f32 1.442695, %v1991_v21  ;;  %v1994_v26 = vmul.f32 1.442695, %v1990_v22 }
 0x3e2   : > { %v1384_v34 = vpop.permute.xlu1 %1383 }
 0x3e3   : > { %3148 = vpow2.f32 %v1996_v25  ;;  %v1405_v35 = vcombine.low %v1372_v63, %v1384_v34  ;;  %v1406_v36 = vcombine.high %v1372_v63, %v1384_v34  ;;  %v1659_v25 = vcombine.low %v1640_v17, %v1656_v30 }
 0x3e4   : > { %3150 = vpow2.f32 %v1994_v26  ;;  %v1658_v34 = vcombine.high %v1633_v10, %v1649_v11 }
 0x3e5   : > { %v1413_v39 = vrot.slane %v1405_v35, %v3975_v44  ;;  %v1420_v40 = vrot.slane %v1406_v36, %v3975_v44 }
 0x3e6   : > { %v1989_v45 = vpop.xlane.xlu0 %1988 }
 0x3e7   : > { %v1421_v46 = vcombine.low %v1397_v37, %v1413_v39  ;;  %v1422_v47 = vcombine.high %v1397_v37, %v1413_v39  ;;  %v1437_v48 = vcombine.low %v1404_v38, %v1420_v40  ;;  %v1438_v49 = vcombine.high %v1404_v38, %v1420_v40 }
 0x3e8   : > { %v1993_v50 = vsub.f32 %v4063_v56, %v1989_v45  ;;  %v1660_v37 = vcombine.high %v1640_v17, %v1656_v30  ;;  %v2467_v45 = vld [vmem:[%s4327_s27 + $0x8] sm:$0xff] }
 0x3e9   : > { %v1429_v51 = vrot.slane %v1421_v46, %v3979_v58  ;;  %v1436_v52 = vrot.slane %v1422_v47, %v3979_v58  ;;  %v1445_v53 = vrot.slane %v1437_v48, %v3979_v58  ;;  %v1452_v54 = vrot.slane %v1438_v49, %v3979_v58 }
 0x3ea   : > { %v2000_v57 = vmul.f32 1.442695, %v1993_v50 }
 0x3eb   : > { %v1525_v61 = vcombine.low %v1429_v51, %v1436_v52  ;;  %v2813_v62 = vcombine.high %v1429_v51, %v1436_v52  ;;  %v1541_v63 = vcombine.low %v1445_v53, %v1452_v54  ;;  %v2814_v27 = vcombine.high %v1445_v53, %v1452_v54 }
 0x3ec   : > { %3152 = vpow2.f32 %v2000_v57 }
 0x3ed   : > { %v3149_v4 = vpop.eup %3148  ;;  %v1532_v56 = vrot.slane %v1525_v61, %v3975_v44  ;;  %v1540_v5 = vrot.slane %v2813_v62, %v3975_v44  ;;  %v1548_v6 = vrot.slane %v1541_v63, %v3975_v44  ;;  %v1556_v7 = vrot.slane %v2814_v27, %v3975_v44 }
 0x3ee   : > { %v3151_v8 = vpop.eup %3150  ;;  %v2005_v9 = vsel %vm759_vm1, %v3149_v4, 0.0 }
 0x3ef   : > { %v2002_v12 = vsel %vm759_vm1, %v3151_v8, 0.0  ;;  %2006 = vadd.xlane.f32.xlu1 %v2005_v9  ;;  %v1557_v13 = vcombine.low %v1532_v56, %v1540_v5  ;;  %v1573_v14 = vcombine.low %v1548_v6, %v1556_v7  ;;  %v1558_v15 = vcombine.high %v1532_v56, %v1540_v5 }
 0x3f0   : > { %2003 = vadd.xlane.f32.xlu0 %v2002_v12  ;;  %v1574_v16 = vcombine.high %v1548_v6, %v1556_v7 }
 0x3f1   : > { %v1565_v18 = vrot.slane %v1557_v13, %v3979_v58  ;;  %v1581_v19 = vrot.slane %v1573_v14, %v3979_v58  ;;  %v1572_v20 = vrot.slane %v1558_v15, %v3979_v58  ;;  %v2468_v15 = vld [vmem:[%s4327_s27 + $0x10] sm:$0xff] }
 0x3f2   : > { %v1588_v21 = vrot.slane %v1574_v16, %v3979_v58  ;;  %v2469_v16 = vld [vmem:[%s4327_s27 + $0x18] sm:$0xff] }
 0x3f3   : > { %v1589_v22 = vcombine.low %v1565_v18, %v1581_v19  ;;  %v1590_v28 = vcombine.high %v1565_v18, %v1581_v19 }
 0x3f4   : > { %v1591_v24 = vcombine.low %v1572_v20, %v1588_v21  ;;  %v1592_v36 = vcombine.high %v1572_v20, %v1588_v21  ;;  %v3025_v20 = vpack.c.bf16 %v2469_v16, %v2468_v15 }
 0x3f5   : > { %v3010_v26 = vpack.c.bf16 %v1657_v23, %v1589_v22  ;;  %v3013_v35 = vpack.c.bf16 %v1658_v34, %v1590_v28 }
 0x3f6   : > { %v3153_v29 = vpop.eup %3152  ;;  %v3016_v31 = vpack.c.bf16 %v1659_v25, %v1591_v24  ;;  %v3019_v38 = vpack.c.bf16 %v1660_v37, %v1592_v36 }
 0x3f7   : > { %3011 = vmatpush3.bf16.msra.mxu1 %v3010_v26  ;;  %v2011_v33 = vsel %vm759_vm1, %v3153_v29, 0.0 }
 0x3f8   : > { %3017 = vmatpush3.bf16.msra.mxu0 %v3016_v31  ;;  %2012 = vadd.xlane.f32.xlu1 %v2011_v33 }
 0x3f9   : > { %3012 = vmatprep.subr.bf16.mxu1 %v3479_v0  ;;  %3021 = vmatprep.subr.bf16.mxu0 %v3479_v0 }
 0x3fa   : > { %2945 = vmatmul.mubr.msk.f32.vlgmr.msra.gmra.mrb[8].mxu1 %vm759_vm1, %v3151_v8 }
 0x3fb   : > { %3014 = vmatpush3.bf16.msra.mxu1 %v3013_v35  ;;  %2951 = vmatprep.mubr.msk.f32.mxu1 %vm3480_vm0, %v3481_v1 }
 0x3fc   : > { %3018 = vmatprep.subr.bf16.mxu1 %v3479_v0 }
 0x3fe   : > { %2952 = vmatmul.mubr.msk.f32.vlgmr.msra.gmra.mrb[10].mxu1 %vm759_vm1, %v3149_v4 }
 0x3ff   : > { %3020 = vmatpush3.bf16.msra.mxu1 %v3019_v38  ;;  %2965 = vmatprep.mubr.msk.f32.mxu1 %vm3480_vm0, %v3481_v1 }
 0x402   : > { %2966 = vmatmul.mubr.msk.f32.vlgmr.msra.gmra.mrb[12].mxu1 %vm759_vm1, %v3153_v29 }
 0x413   : > { %v1986_v39 = vpop.xlane.xlu1 %1985 }
 0x414   : > { %v1992_v40 = vsub.f32 %v4061_v55, %v1986_v39  ;;  %v3022_v55 = vpack.c.bf16 %v2467_v45, %v2466_v43 }
 0x416   : > { %v1998_v32 = vmul.f32 1.442695, %v1992_v40 }
 0x418   : > { %3154 = vpow2.f32 %v1998_v32 }
 0x422   : > { %v3155_v41 = vpop.eup %3154 }
 0x423   : > { %2959 = vmatmul.mubr.msk.f32.vlgmr.msra.gmra.mrb[6].mxu0 %vm759_vm1, %v3155_v41  ;;  %v2008_v42 = vsel %vm759_vm1, %v3155_v41, 0.0 }
 0x424   : > { %2009 = vadd.xlane.f32.xlu0 %v2008_v42  ;;  %2976 = vmatprep.mubr.msk.f32.mxu0 %vm3480_vm0, %v3481_v1 }
 0x425   : > { %3023 = vmatpush3.bf16.msra.mxu0 %v3022_v55 }
 0x426   : > { %3024 = vmatprep.subr.bf16.mxu0 %v3479_v0 }
 0x429   : > { %3026 = vmatpush3.bf16.msra.mxu0 %v3025_v20 }
 0x47c   : > { %v2007_v46 = vpop.xlane.xlu1 %2006 }
 0x47d   : > { %3156 = vrcp.f32 %v2007_v46  ;;  %v2004_v62 = vpop.xlane.xlu0 %2003 }
 0x485   : > { %v2013_v47 = vpop.xlane.xlu1 %2012 }
 0x486   : > { %3158 = vrcp.f32 %v2013_v47  ;;  %v2835_v47 = vld [vmem:[%s4328_s24] ss:$0 sm:$0xff] }
 0x487   : > { %v3157_v51 = vpop.eup %3156  ;;  %3160 = vrcp.f32 %v2004_v62 }
 0x490   : > { %v3159_v52 = vpop.eup %3158 }
 0x491   : > { %v3161_v0 = vpop.eup %3160 }
 0x4b1   : > { %v2010_v63 = vpop.xlane.xlu0 %2009 }
 0x4b2   : > { %3162 = vrcp.f32 %v2010_v63 }
 0x4bc   : > { %v3163_v27 = vpop.eup %3162 }
 0x4cd   : > { %v2083_v48 = vpop.f32.mrb[8].mxu1 }
 0x4ce   : > { %v2946_v49 = vpop.f32.mrb[9].mxu1  ;;  %v2310_v3 = vmul.f32 %v3161_v0, %v2083_v48 }
 0x4cf   : > { %v2550_v49 = vld [vmem:[%s588_s5] sm:$0xff]  ;;  %s4330_s5 = sld [smem:[#allocation26_spill]] }
 0x4d1   : > { %v2156_v50 = vpop.f32.mrb[10].mxu1 }
 0x4d2   : > { %v2953_v1 = vpop.f32.mrb[11].mxu1  ;;  %v2311_v54 = vmul.f32 %v3157_v51, %v2156_v50 }
 0x4d5   : > { %v2302_v53 = vpop.f32.mrb[12].mxu1  ;;  %p4334_p8 = scmp.ne.s32.totalorder %s4330_s5, 0 }
 0x4d6   : > { %v2313_v57 = vmul.f32 %v3159_v52, %v2302_v53  ;;  %v2967_v59 = vpop.f32.mrb[13].mxu1 }
 0x4d8   : > { %v2330_v60 = vcombine.low %v2311_v54, %v2313_v57  ;;  %v2331_v61 = vcombine.high %v2311_v54, %v2313_v57 }
 0x4da   : > { %v2338_v7 = vrot.slane %v2330_v60, %v3975_v44  ;;  %v2345_v8 = vrot.slane %v2331_v61, %v3975_v44 }
 0x4f6   : > { %v2229_v2 = vpop.f32.mrb[6].mxu0 }
 0x4f7   : > { %v2312_v4 = vmul.f32 %v3163_v27, %v2229_v2  ;;  %v2960_v56 = vpop.f32.mrb[7].mxu0  ;;  %v2837_v27 = vld [vmem:[%s4331_s29] ss:$0 sm:$0xff] }
 0x4f9   : > { %v2314_v5 = vcombine.low %v2310_v3, %v2312_v4  ;;  %v2315_v6 = vcombine.high %v2310_v3, %v2312_v4  ;;  %v2838_v3 = vld [vmem:[%s4332_s14] ss:$0 sm:$0xff] }
 0x4fb   : > { %v2322_v9 = vrot.slane %v2314_v5, %v3975_v44  ;;  %v2329_v10 = vrot.slane %v2315_v6, %v3975_v44 }
 0x4fd   : > { %v2346_v11 = vcombine.low %v2322_v9, %v2338_v7  ;;  %v2347_v12 = vcombine.high %v2322_v9, %v2338_v7  ;;  %v2362_v13 = vcombine.low %v2329_v10, %v2345_v8  ;;  %v2363_v14 = vcombine.high %v2329_v10, %v2345_v8 }
 0x4ff   : > { %v2354_v17 = vrot.slane %v2346_v11, %v3979_v58  ;;  %v2361_v30 = vrot.slane %v2347_v12, %v3979_v58  ;;  %v2370_v18 = vrot.slane %v2362_v13, %v3979_v58  ;;  %v2377_v19 = vrot.slane %v2363_v14, %v3979_v58 }
 0x501   : > { %v2382_v21 = vcombine.low %v2354_v17, %v2361_v30  ;;  %v2833_v22 = vcombine.high %v2354_v17, %v2361_v30  ;;  %v2398_v23 = vcombine.low %v2370_v18, %v2377_v19  ;;  %v2834_v24 = vcombine.high %v2370_v18, %v2377_v19 }
 0x503   : > { %v2389_v25 = vrot.slane %v2382_v21, %v3975_v44  ;;  %v2397_v26 = vrot.slane %v2833_v22, %v3975_v44  ;;  %v2405_v28 = vrot.slane %v2398_v23, %v3975_v44  ;;  %v2413_v29 = vrot.slane %v2834_v24, %v3975_v44 }
 0x505   : > { %v2415_v31 = vcombine.high %v2389_v25, %v2397_v26  ;;  %v2431_v33 = vcombine.high %v2405_v28, %v2413_v29  ;;  %v2414_v34 = vcombine.low %v2389_v25, %v2397_v26  ;;  %v2430_v35 = vcombine.low %v2405_v28, %v2413_v29 }
 0x507   : > { %v2429_v36 = vrot.slane %v2415_v31, %v3979_v58  ;;  %v2445_v37 = vrot.slane %v2431_v33, %v3979_v58  ;;  %v2422_v38 = vrot.slane %v2414_v34, %v3979_v58  ;;  %v2438_v39 = vrot.slane %v2430_v35, %v3979_v58 }
 0x509   : > { %v2448_v40 = vcombine.low %v2429_v36, %v2445_v37  ;;  %v2447_v32 = vcombine.high %v2422_v38, %v2438_v39  ;;  %v2449_v41 = vcombine.high %v2429_v36, %v2445_v37  ;;  %v2446_v42 = vcombine.low %v2422_v38, %v2438_v39 }
 0x50b   : > { %2455 = vrot.lane.b32.xlu1 %v2448_v40, %s3487_s9  ;;  %2451 = vrot.lane.b32.xlu0 %v2447_v32, %s3488_s1  ;;  %s2584_s9 = scalar_lea.sflag [#allocation4], %s3893_s12  ;;  %s3370_s1 = scalar_lea.vmem %s4178_s22, 128 }
 0x50c   : > { %p3371_p4 = scmp.ne.s32.totalorder %s4178_s22, %s3370_s1 }
 0x50e   : > { %p3372_p10 = pnand %p3371_p4, %p4334_p8 }
 0x50f   : > { %2459 = vrot.lane.b32.xlu1 %v2449_v41, %s3489_s7  ;;  %s3374_s7 = sshll.u32 %s3490_s28, 4  ;;  %s3375_s7 = int_to_ptr.vmem [resolvable:$false] %s3374_s7 }
 0x510   : > { %p3373_p5 = pneg %p3372_p10  ;;  %s3376_s19 = scalar_lea.vmem %s3375_s7, 256 }
 0x511   : > { %p3377_p9 = scmp.lt.s32.totalorder %s4178_s22, %s3375_s7  ;;  %p3378_p13 = scmp.lt.s32.totalorder %s3376_s19, %s3370_s1 }
 0x513   : > { %p3379_p3 = por %p3378_p13, %p3377_p9 }
 0x515   : > { %p3380_p12 = pnand %p3379_p3, %p3373_p5 }
 0x57d   : > { %v2456_v44 = vpop.permute.xlu1 %2455  ;;  %v2452_v43 = vpop.permute.xlu0 %2451 }
 0x57e   : > { %v2462_v45 = vsel %vm1661_vm3, %v2446_v42, %v2452_v43 }
 0x57f   : > { %v2463_v46 = vsel %vm759_vm1, %v2462_v45, %v2456_v44 }
 0x581   : > { %v2460_v55 = vpop.permute.xlu1 %2459 }
 0x582   : > { %v2465_v58 = vsel %vm2464_vm5, %v2463_v46, %v2460_v55 }
 0x583   : > { %2977 = vmatmul.mubr.msk.f32.vlgmr.msra.gmra.mrb[8].mxu0 %vm676_vm2, %v2465_v58 }
 0x656   : > { %v2546_v48 = vpop.f32.mrb[8].mxu0 }
 0x657   : > { %v2547_v50 = vadd.f32 %v2835_v47, %v2546_v48  ;;  %v2978_v1 = vpop.f32.mrb[9].mxu0 }
 0x659   : > { %v2551_v51 = vadd.f32 %v2550_v49, %v2547_v50 }
 0x65b   : > { %v2552_v52 = vsel %vm676_vm2, %v2551_v51, 0.0 }
 0x65c   : > { %2553 = vadd.xlane.f32.xlu0 %v2552_v52 }
 0x6e9   : > { %v2554_v53 = vpop.xlane.xlu0 %2553 }
 0x6ea   : > { %v2556_v54 = vmul.f32 0.03125, %v2554_v53 }
 0x6ec   : > { %v2557_v57 = vsub.f32 %v2551_v51, %v2556_v54 }
 0x6ee   : > { %v2558_v59 = vmul.f32 %v2557_v57, %v2557_v57 }
 0x6f0   : > { %v2559_v60 = vsel %vm676_vm2, %v2558_v59, 0.0 }
 0x6f1   : > { %2560 = vadd.xlane.f32.xlu1 %v2559_v60 }
 0x77e   : > { %v2561_v61 = vpop.xlane.xlu1 %2560 }
 0x77f   : > { %v2562_v62 = vmul.f32 0.03125, %v2561_v61 }
 0x781   : > { %v2563_v63 = vadd.f32 1e-05, %v2562_v62 }
 0x783   : > { %3164 = vrsqrt.f32 %v2563_v63 }
 0x78d   : > { %v3165_v0 = vpop.eup %3164 }
 0x78e   : > { %v2565_v2 = vmul.f32 %v3165_v0, %v2557_v57 }
 0x790   : > { %v2573_v4 = vmul.f32 %v2837_v27, %v2565_v2 }
 0x792   : > { %v2581_v56 = vadd.f32 %v2838_v3, %v2573_v4 }
 0x794   : > { %2582 = vst.msk [vmem:[%s659_s26] sm:$0xff] %vm676_vm2, %v2581_v56 }
 0x795   : > { %3383 = shalt.err (!%p3380_p12)
}
 0x796   : > { %s3384_s12 = scalar_lea.hbm %s4176_s11, 128  ;;  %s3388_s16 = scalar_lea.hbm %s4333_s20, 256 }
 0x797   : > { %p3385_p6 = scmp.ne.s32.totalorder %s4176_s11, %s3384_s12  ;;  %p3389_p0 = scmp.lt.u32.totalorder %s4176_s11, %s4333_s20 }
 0x798   : > { %p3390_p1 = scmp.lt.u32.totalorder %s3388_s16, %s3384_s12  ;;  %p3392_p4 = scmp.lt.u32.totalorder %s3384_s12, %s4176_s11 }
 0x799   : > { %p3386_p11 = pnand %p3385_p6, %p4334_p8 }
 0x79a   : > { %p3391_p2 = por %p3390_p1, %p3389_p0 }
 0x79b   : > { %p3387_p7 = pneg %p3386_p11 }
 0x79c   : > { %p3393_p10 = por %p3392_p4, %p3391_p2 }
 0x79e   : > { %p3394_p5 = pnand %p3393_p10, %p3387_p7 }
 0x7a0   : > { %3397 = shalt.err (!%p3394_p5)
}
 0x7a1   : > { %3047 = dma.vmem_to_hbm [thread:$0]  (%p4334_p8), %s4178_s22, 128, %s4176_s11, %s2584_s9  }
 0x7a2 PF: > { %s4335_s29 = sld [smem:[#allocation21_spill]]  ;;  %s4336_s25 = sld [smem:[#allocation27_spill]] }
 0x7a3   : > { %p4338_p13 = scmp.ge.s32.totalorder %s3468_s18, 2 }
 0x7a8   : > { %s2610_s4 = sand.u32 1, %s4335_s29   ;;  %p4337_p9 = scmp.ne.s32.totalorder %s4336_s25, 0 }
 0x7a9   : > { %s2611_s14 = scalar_lea.sflag [#allocation4], %s2610_s4 }
 0x7aa   : > { %p3073_p3 = pnand %p4338_p13, %p4337_p9 }
 0x7ac   : > { %3443 = dma.done.wait (!%p3073_p3), %s2611_s14, 128  }
 0x7ad   : > { %3445 = vsyncadd (!%p3073_p3), %s2611_s14, 4294967168  ;;  %s37_s18 = sadd.s32 1, %s3468_s18   ;;  %s4339_s10 = sld [smem:[#allocation22_spill]] }
 0x7ae   : > { %p34_p12 = scmp.ge.s32.totalorder %s37_s18, 4   ;;  %s4340_s15 = sld [smem:[#allocation29_spill]] }
 0x7af   : > { %s4341_s5 = sld [smem:[#allocation28_spill]]  ;;  %s4342_s29 = smov %s3452_s30 }
 0x7b0   : > { %s4344_s16 = smov %s3464_s17  ;;  %36 = sbr.rel (!%p34_p12) target bundleno = 23 (0x17), region = 170 }
 0x7b3   : > { %s4343_s30 = smov %s4339_s10 }
 0x7b5   : > { %s4345_s17 = smov %s4341_s5 }
 0x7b7   :  { %2616 = vsyncpa [#allocation3], 1 }
 0x7b8   :  { %2618 = vsyncpa [#allocation3 + $0x1], 1 }
 0x7b9   :  { %2619 = vsyncpa [#allocation6], 1 }
 0x7ba   :  { %2621 = vsyncpa [#allocation6 + $0x1], 1 }
 0x7bb   :  { %2622 = vsyncpa [#allocation9], 1 }
 0x7bc   :  { %2624 = vsyncpa [#allocation9 + $0x1], 1 }
 0x7bd   :  { %2625 = vsyncpa [#allocation12], 1 }
 0x7be   :  { %2626 = vsyncpa [#allocation4], 1 }
 0x7bf   :  { %2628 = vsyncpa [#allocation4 + $0x1], 1 }

</bundles_post_ra>
